<compile_context>
chip_gen: v7x
topology: tpu7x:2x2x1
jax: 0.10.0
libtpu: 0.0.40
codegen_flags: <defaults>
</compile_context>

<pallas_src>
import functools

import numpy as np

import jax
import jax.numpy as jnp
from jax.experimental import pallas as pl
from jax.experimental.pallas import tpu as pltpu


# ---------------------------------------------------------------------------
# Precomputed 0/1 spatial operators (pure numpy, shape-only; built once)
# ---------------------------------------------------------------------------
def _gather_matrix(hi, wi, stride):
    """ST[t] of shape (Hi*Wi, Ho*Wo): for activations stored as (C, Hi*Wi),
    (h @ ST[t]) selects, for every output pixel, the padded/strided input
    pixel of 3x3-tap t (an all-zero column encodes zero padding)."""
    ho = (hi + 2 - 3) // stride + 1
    wo = (wi + 2 - 3) // stride + 1
    st = np.zeros((9, hi * wi, ho * wo), np.float32)
    for ki in range(3):
        for kj in range(3):
            t = ki * 3 + kj
            for oi in range(ho):
                ii = stride * oi + ki - 1
                if not 0 <= ii < hi:
                    continue
                for oj in range(wo):
                    jj = stride * oj + kj - 1
                    if 0 <= jj < wi:
                        st[t, ii * wi + jj, oi * wo + oj] = 1.0
    return st, ho, wo


def _upsample_matrix(hi, wi):
    """UT of shape (Hi*Wi, 4*Hi*Wi): (x @ UT) is an exact nearest 2x upsample."""
    ho, wo = 2 * hi, 2 * wi
    ut = np.zeros((hi * wi, ho * wo), np.float32)
    for oi in range(ho):
        for oj in range(wo):
            ut[(oi // 2) * wi + (oj // 2), oi * wo + oj] = 1.0
    return ut


# ---------------------------------------------------------------------------
# The single fused Pallas kernel
# ---------------------------------------------------------------------------
def _bottleneck_kernel(x_ref, fa_ref, fb_ref,
                       s1_ref, b1_ref, w1_ref,
                       s2_ref, b2_ref, st2_ref, wt2_ref,
                       s3_ref, b3_ref, st3_ref, wt3_ref,
                       s4_ref, b4_ref, st4_ref, wt4_ref,
                       w5_ref, ut2_ref, o_ref):
    f32 = jnp.float32
    bf = jnp.bfloat16

    def conv3x3(h, st_ref, wt_ref):
        # h: (Cin_k, Nin) f32 ; st_ref: (9, Nin, Nout) bf16 (0/1 gather)
        # wt_ref: (9, Cout_k, Cin_k) bf16 ; returns (Cout_k, Nout) f32
        hb = h.astype(bf)
        acc = None
        for t in range(9):                                 # unrolled, 9 taps
            g = jnp.dot(hb, st_ref[t], preferred_element_type=f32)
            d = jnp.dot(wt_ref[t], g.astype(bf), preferred_element_type=f32)
            acc = d if acc is None else acc + d
        return acc

    x = x_ref[0]                                           # (Cin, HW) f32

    # conv1( relu( bn1(x) ) )  -- 1x1 conv as matmul
    h = jnp.maximum(x * s1_ref[...] + b1_ref[...], 0.0)
    a = jnp.dot(w1_ref[...], h.astype(bf), preferred_element_type=f32)

    # conv2( relu( bn2 ) ), 3x3 stride s : HW -> HW/4
    h = jnp.maximum(a * s2_ref[...] + b2_ref[...], 0.0)
    a = conv3x3(h, st2_ref, wt2_ref)

    # conv3( relu( bn3 ) ), 3x3 stride s : HW/4 -> HW/16
    h = jnp.maximum(a * s3_ref[...] + b3_ref[...], 0.0)
    a = conv3x3(h, st3_ref, wt3_ref)

    # conv4( relu( bn4( up2x ) ) ): bn4+relu are per-channel pointwise so they
    # commute with nearest upsampling; the upsample is pre-folded into the 0/1
    # gather operators st4 (= up @ gather), giving identical numerics with one
    # fewer matmul and a 4x smaller gather contraction.
    h = jnp.maximum(a * s4_ref[...] + b4_ref[...], 0.0)
    a = conv3x3(h, st4_ref, wt4_ref)                       # (planes, HW/4)

    # FiLM-conditioned bn5 (+ReLU) folded to a per-(batch, channel) affine
    # (applied before the commuting nearest 2x upsample), then the exact 0/1
    # bf16 selection upsample, then conv5 (1x1) + residual.
    h = jnp.maximum(a * fa_ref[0] + fb_ref[0], 0.0)
    hu = jnp.dot(h.astype(bf), ut2_ref[...], preferred_element_type=f32)
    a = jnp.dot(w5_ref[...], hu.astype(bf), preferred_element_type=f32)

    o_ref[0] = a + x


# ---------------------------------------------------------------------------
# JAX wrapper
# ---------------------------------------------------------------------------
def _fold_bn(bn, eps=1e-5):
    g, b, m, v = bn
    s = g / jnp.sqrt(v + eps)
    return s[:, None], (b - m * s)[:, None]               # (C,1), (C,1)


def pack_params(p, H, W, stride):
    """One-time packing: bf16 tap-major conv weights + 0/1 spatial operators."""
    bf = jnp.bfloat16
    st2, h2, w2 = _gather_matrix(H, W, stride)
    st3, h3, w3 = _gather_matrix(h2, w2, stride)
    ut1 = _upsample_matrix(h3, w3)                         # (h3w3, 4*h3w3)
    st4, h4, w4 = _gather_matrix(2 * h3, 2 * w3, 1)        # (9, 4*h3w3, h4w4)
    # Fold the first nearest-2x upsample into conv4's gather: still a 0/1
    # matrix (each column selects at most one source pixel) -> exact in bf16.
    st4u = np.einsum("ij,tjk->tik", ut1, st4)              # (9, h3w3, h4w4)
    ut2 = _upsample_matrix(h4, w4)
    assert (2 * h4, 2 * w4) == (H, W), "residual add requires stride=2 path"

    def taps(w):                                           # OIHW -> (9, Cout, Cin)
        co, ci, kh, kw = w.shape
        return jnp.asarray(
            jnp.transpose(w, (2, 3, 0, 1)).reshape(kh * kw, co, ci), bf)

    return {
        "w1": jnp.asarray(p["w1"][:, :, 0, 0], bf),        # (planes, Cin)
        "w5": jnp.asarray(p["w5"][:, :, 0, 0], bf),        # (Cin, planes)
        "wt2": taps(p["w2"]), "wt3": taps(p["w3"]), "wt4": taps(p["w4"]),
        "st2": jnp.asarray(st2, bf), "st3": jnp.asarray(st3, bf),
        "st4": jnp.asarray(st4u, bf),
        "ut2": jnp.asarray(ut2, bf),                       # 0/1 selection, exact
    }


def bottleneck_forward(x, emb, p, packed, planes):
    """x: (B, Cin, H, W) f32 NCHW (PyTorch layout); emb: (B, 4*planes) f32."""
    B, Cin, H, W = x.shape
    HW = H * W
    f32 = jnp.float32

    s1, b1 = _fold_bn(p["bn1"])
    s2, b2 = _fold_bn(p["bn2"])
    s3, b3 = _fold_bn(p["bn3"])
    s4, b4 = _fold_bn(p["bn4"])
    s5, b5 = _fold_bn(p["bn5"])                            # (planes, 1)

    # emb path (tiny; plain JAX): SiLU -> Linear(4p, 2p); fold bn5 & FiLM into
    # a per-(batch, channel) affine passed to the kernel as (B, planes, 1).
    e = emb * jax.nn.sigmoid(emb)
    emb_out = e @ p["w_emb"].T + p["b_emb"][None, :]       # (B, 2p)
    scale = emb_out[:, :planes]
    shift = emb_out[:, planes:]
    fa = (s5.T * (1.0 + scale))[:, :, None]                # (B, p, 1)
    fb = (b5.T * (1.0 + scale) + shift)[:, :, None]        # (B, p, 1)

    x3 = x.reshape(B, Cin, HW)

    consts = [s1, b1, packed["w1"],
              s2, b2, packed["st2"], packed["wt2"],
              s3, b3, packed["st3"], packed["wt3"],
              s4, b4, packed["st4"], packed["wt4"],
              packed["w5"], packed["ut2"]]

    def const_spec(a):                                     # grid-invariant input
        n = a.ndim
        return pl.BlockSpec(a.shape, lambda b, n=n: (0,) * n)

    in_specs = ([pl.BlockSpec((1, Cin, HW), lambda b: (b, 0, 0)),
                 pl.BlockSpec((1, planes, 1), lambda b: (b, 0, 0)),
                 pl.BlockSpec((1, planes, 1), lambda b: (b, 0, 0))]
                + [const_spec(a) for a in consts])

    out = pl.pallas_call(
        _bottleneck_kernel,
        out_shape=jax.ShapeDtypeStruct((B, Cin, HW), f32),
        grid=(B,),
        in_specs=in_specs,
        out_specs=pl.BlockSpec((1, Cin, HW), lambda b: (b, 0, 0)),
        compiler_params=pltpu.CompilerParams(
            dimension_semantics=("parallel",),             # v7x: 2 TCs over batch
            vmem_limit_bytes=32 * 1024 * 1024),
    )(x3, fa, fb, *consts)

    return out.reshape(B, Cin, H, W)


# ---------------------------------------------------------------------------
# Pure-JAX reference (eval-mode BN; weights rounded to bf16 like the kernel)
# ---------------------------------------------------------------------------
def reference_forward(x, emb, p, planes, stride):
    f32, bf = jnp.float32, jnp.bfloat16
    hi = jax.lax.Precision.HIGHEST

    def q(w):
        return w.astype(bf).astype(f32)

    def bn(v, prm):
        g, b, m, var = prm
        s = g / jnp.sqrt(var + 1e-5)
        return v * s[None, :, None, None] + (b - m * s)[None, :, None, None]

    def conv(v, w, stride=1, pad=0):
        return jax.lax.conv_general_dilated(
            v, w, (stride, stride), [(pad, pad), (pad, pad)],
            dimension_numbers=("NCHW", "OIHW", "NCHW"), precision=hi)

    def up(v):
        return jnp.repeat(jnp.repeat(v, 2, axis=2), 2, axis=3)

    out = conv(jax.nn.relu(bn(x, p["bn1"])), q(p["w1"]))
    out = conv(jax.nn.relu(bn(out, p["bn2"])), q(p["w2"]), stride, 1)
    out = conv(jax.nn.relu(bn(out, p["bn3"])), q(p["w3"]), stride, 1)
    out = up(out)
    out = conv(jax.nn.relu(bn(out, p["bn4"])), q(p["w4"]), 1, 1)
    out = up(out)
    e = emb * jax.nn.sigmoid(emb)
    emb_out = jnp.dot(e, p["w_emb"].T, precision=hi) + p["b_emb"][None, :]
    scale = emb_out[:, :planes, None, None]
    shift = emb_out[:, planes:, None, None]
    out = bn(out, p["bn5"]) * (1.0 + scale) + shift
    out = conv(jax.nn.relu(out), q(p["w5"]))
    return out + x


# ---------------------------------------------------------------------------
# Deterministic parameter initialization (PyTorch layouts)
# ---------------------------------------------------------------------------
def init_params(key, in_planes, planes):
    ks = jax.random.split(key, 12)

    def bn(k, c):
        k1, k2, k3, k4 = jax.random.split(k, 4)
        gamma = 1.0 + 0.1 * jax.random.normal(k1, (c,), jnp.float32)
        beta = 0.1 * jax.random.normal(k2, (c,), jnp.float32)
        mean = 0.1 * jax.random.normal(k3, (c,), jnp.float32)
        var = jax.random.uniform(k4, (c,), jnp.float32, 0.5, 1.5)
        return gamma, beta, mean, var

    p4 = planes * 4
    return {
        "bn1": bn(ks[0], in_planes),
        "bn2": bn(ks[1], planes),
        "bn3": bn(ks[2], p4),
        "bn4": bn(ks[3], p4),
        "bn5": bn(ks[4], planes),
        # conv weights in PyTorch OIHW layout
        "w1": 0.1 * jax.random.normal(ks[5], (planes, in_planes, 1, 1), jnp.float32),
        "w2": 0.1 * jax.random.normal(ks[6], (p4, planes, 3, 3), jnp.float32),
        "w3": 0.1 * jax.random.normal(ks[7], (p4, p4, 3, 3), jnp.float32),
        "w4": 0.1 * jax.random.normal(ks[8], (planes, p4, 3, 3), jnp.float32),
        "w5": 0.1 * jax.random.normal(ks[9], (in_planes, planes, 1, 1), jnp.float32),
        # emb Linear(4p -> 2p), PyTorch (out, in) weight layout
        "w_emb": 0.1 * jax.random.normal(ks[10], (2 * planes, p4), jnp.float32),
        "b_emb": 0.1 * jax.random.normal(ks[11], (2 * planes,), jnp.float32),
    }


if __name__ == "__main__":
    in_planes, planes, stride = 16, 8, 2   # stride=2 required for residual add
    B, H, W = 2, 16, 16

    key = jax.random.PRNGKey(0)
    kx, ke, kp = jax.random.split(key, 3)
    x = jax.random.normal(kx, (B, in_planes, H, W), jnp.float32)   # NCHW
    emb = jax.random.normal(ke, (B, planes * 4), jnp.float32)
    params = init_params(kp, in_planes, planes)
    packed = pack_params(params, H, W, stride)

    fwd = jax.jit(functools.partial(bottleneck_forward, planes=planes))
    out = fwd(x, emb, params, packed)
    jax.block_until_ready(out)

    assert out.shape == (B, in_planes, H, W) and out.dtype == jnp.float32

    # correctness check against a pure-JAX reference (tolerance covers the
    # bf16 rounding of activations at the MXU inputs inside the kernel)
    ref = jax.jit(functools.partial(reference_forward, planes=planes,
                                    stride=stride))(x, emb, params)
    err = float(jnp.max(jnp.abs(out - ref)))
    assert err < 5e-2, f"max abs err {err}"

    print("KERNEL_OK")
</pallas_src>

<mosaic_0001>
module attributes {stable_mosaic.version = 11 : i64} {
  func.func @_bottleneck_kernel(%arg0: i32, %arg1: memref<1x16x256xf32, #tpu.memory_space<vmem>>, %arg2: memref<1x8x1xf32, #tpu.memory_space<vmem>>, %arg3: memref<1x8x1xf32, #tpu.memory_space<vmem>>, %arg4: memref<16x1xf32, #tpu.memory_space<vmem>>, %arg5: memref<16x1xf32, #tpu.memory_space<vmem>>, %arg6: memref<8x16xbf16, #tpu.memory_space<vmem>>, %arg7: memref<8x1xf32, #tpu.memory_space<vmem>>, %arg8: memref<8x1xf32, #tpu.memory_space<vmem>>, %arg9: memref<9x256x64xbf16, #tpu.memory_space<vmem>>, %arg10: memref<9x32x8xbf16, #tpu.memory_space<vmem>>, %arg11: memref<32x1xf32, #tpu.memory_space<vmem>>, %arg12: memref<32x1xf32, #tpu.memory_space<vmem>>, %arg13: memref<9x64x16xbf16, #tpu.memory_space<vmem>>, %arg14: memref<9x32x32xbf16, #tpu.memory_space<vmem>>, %arg15: memref<32x1xf32, #tpu.memory_space<vmem>>, %arg16: memref<32x1xf32, #tpu.memory_space<vmem>>, %arg17: memref<9x16x64xbf16, #tpu.memory_space<vmem>>, %arg18: memref<9x8x32xbf16, #tpu.memory_space<vmem>>, %arg19: memref<16x8xbf16, #tpu.memory_space<vmem>>, %arg20: memref<64x256xbf16, #tpu.memory_space<vmem>>, %arg21: memref<1x16x256xf32, #tpu.memory_space<vmem>>) attributes {dimension_semantics = [#tpu.dimension_semantics<parallel>], iteration_bounds = array<i64: 2>, scalar_prefetch = 0 : i64, scratch_operands = 0 : i64, tpu.core_type = #tpu.core_type<tc>, window_params = [{transform_indices = @transform_0, window_bounds = array<i64: 1, 16, 256>}, {transform_indices = @transform_1, window_bounds = array<i64: 1, 8, 1>}, {transform_indices = @transform_2, window_bounds = array<i64: 1, 8, 1>}, {pipeline_mode = #tpu.pipeline_mode<synchronous>, transform_indices = @transform_3, window_bounds = array<i64: 16, 1>}, {pipeline_mode = #tpu.pipeline_mode<synchronous>, transform_indices = @transform_4, window_bounds = array<i64: 16, 1>}, {pipeline_mode = #tpu.pipeline_mode<synchronous>, transform_indices = @transform_5, window_bounds = array<i64: 8, 16>}, {pipeline_mode = #tpu.pipeline_mode<synchronous>, transform_indices = @transform_6, window_bounds = array<i64: 8, 1>}, {pipeline_mode = #tpu.pipeline_mode<synchronous>, transform_indices = @transform_7, window_bounds = array<i64: 8, 1>}, {pipeline_mode = #tpu.pipeline_mode<synchronous>, transform_indices = @transform_8, window_bounds = array<i64: 9, 256, 64>}, {pipeline_mode = #tpu.pipeline_mode<synchronous>, transform_indices = @transform_9, window_bounds = array<i64: 9, 32, 8>}, {pipeline_mode = #tpu.pipeline_mode<synchronous>, transform_indices = @transform_10, window_bounds = array<i64: 32, 1>}, {pipeline_mode = #tpu.pipeline_mode<synchronous>, transform_indices = @transform_11, window_bounds = array<i64: 32, 1>}, {pipeline_mode = #tpu.pipeline_mode<synchronous>, transform_indices = @transform_12, window_bounds = array<i64: 9, 64, 16>}, {pipeline_mode = #tpu.pipeline_mode<synchronous>, transform_indices = @transform_13, window_bounds = array<i64: 9, 32, 32>}, {pipeline_mode = #tpu.pipeline_mode<synchronous>, transform_indices = @transform_14, window_bounds = array<i64: 32, 1>}, {pipeline_mode = #tpu.pipeline_mode<synchronous>, transform_indices = @transform_15, window_bounds = array<i64: 32, 1>}, {pipeline_mode = #tpu.pipeline_mode<synchronous>, transform_indices = @transform_16, window_bounds = array<i64: 9, 16, 64>}, {pipeline_mode = #tpu.pipeline_mode<synchronous>, transform_indices = @transform_17, window_bounds = array<i64: 9, 8, 32>}, {pipeline_mode = #tpu.pipeline_mode<synchronous>, transform_indices = @transform_18, window_bounds = array<i64: 16, 8>}, {pipeline_mode = #tpu.pipeline_mode<synchronous>, transform_indices = @transform_19, window_bounds = array<i64: 64, 256>}, {transform_indices = @transform_20, window_bounds = array<i64: 1, 16, 256>}]} {
    %c0 = arith.constant 0 : index
    %c0_0 = arith.constant 0 : index
    %c0_1 = arith.constant 0 : index
    %0 = vector.load %arg1[%c0, %c0_0, %c0_1] : memref<1x16x256xf32, #tpu.memory_space<vmem>>, vector<1x16x256xf32>
    %1 = vector.shape_cast %0 : vector<1x16x256xf32> to vector<16x256xf32>
    %c0_2 = arith.constant 0 : index
    %c0_3 = arith.constant 0 : index
    %2 = vector.load %arg4[%c0_2, %c0_3] : memref<16x1xf32, #tpu.memory_space<vmem>>, vector<16x1xf32>
    %3 = vector.broadcast %2 : vector<16x1xf32> to vector<16x256xf32>
    %4 = arith.mulf %1, %3 : vector<16x256xf32>
    %c0_4 = arith.constant 0 : index
    %c0_5 = arith.constant 0 : index
    %5 = vector.load %arg5[%c0_4, %c0_5] : memref<16x1xf32, #tpu.memory_space<vmem>>, vector<16x1xf32>
    %6 = vector.broadcast %5 : vector<16x1xf32> to vector<16x256xf32>
    %7 = arith.addf %4, %6 : vector<16x256xf32>
    %cst = arith.constant 0.000000e+00 : f32
    %8 = vector.broadcast %cst : f32 to vector<16x256xf32>
    %9 = arith.maximumf %7, %8 : vector<16x256xf32>
    %c0_6 = arith.constant 0 : index
    %c0_7 = arith.constant 0 : index
    %10 = vector.load %arg6[%c0_6, %c0_7] : memref<8x16xbf16, #tpu.memory_space<vmem>>, vector<8x16xbf16>
    %11 = arith.truncf %9 : vector<16x256xf32> to vector<16x256xbf16>
    %cst_8 = arith.constant dense<0.000000e+00> : vector<8x256xf32>
    %12 = tpu.matmul %10, %11, %cst_8 {dimension_numbers = #tpu.dot_dimension_numbers<[1], [0], [0], [1], [0, 0, 1, 1], [], []>} : vector<8x16xbf16>, vector<16x256xbf16>, vector<8x256xf32> -> vector<8x256xf32>
    %c0_9 = arith.constant 0 : index
    %c0_10 = arith.constant 0 : index
    %13 = vector.load %arg7[%c0_9, %c0_10] : memref<8x1xf32, #tpu.memory_space<vmem>>, vector<8x1xf32>
    %14 = vector.broadcast %13 : vector<8x1xf32> to vector<8x256xf32>
    %15 = arith.mulf %12, %14 : vector<8x256xf32>
    %c0_11 = arith.constant 0 : index
    %c0_12 = arith.constant 0 : index
    %16 = vector.load %arg8[%c0_11, %c0_12] : memref<8x1xf32, #tpu.memory_space<vmem>>, vector<8x1xf32>
    %17 = vector.broadcast %16 : vector<8x1xf32> to vector<8x256xf32>
    %18 = arith.addf %15, %17 : vector<8x256xf32>
    %cst_13 = arith.constant 0.000000e+00 : f32
    %19 = vector.broadcast %cst_13 : f32 to vector<8x256xf32>
    %20 = arith.maximumf %18, %19 : vector<8x256xf32>
    %21 = arith.truncf %20 : vector<8x256xf32> to vector<8x256xbf16>
    %c0_14 = arith.constant 0 : index
    %c0_15 = arith.constant 0 : index
    %c0_16 = arith.constant 0 : index
    %22 = vector.load %arg9[%c0_14, %c0_15, %c0_16] : memref<9x256x64xbf16, #tpu.memory_space<vmem>>, vector<1x256x64xbf16>
    %23 = vector.shape_cast %22 : vector<1x256x64xbf16> to vector<256x64xbf16>
    %cst_17 = arith.constant dense<0.000000e+00> : vector<8x64xf32>
    %24 = tpu.matmul %21, %23, %cst_17 {dimension_numbers = #tpu.dot_dimension_numbers<[1], [0], [0], [1], [0, 0, 1, 1], [], []>} : vector<8x256xbf16>, vector<256x64xbf16>, vector<8x64xf32> -> vector<8x64xf32>
    %c0_18 = arith.constant 0 : index
    %c0_19 = arith.constant 0 : index
    %c0_20 = arith.constant 0 : index
    %25 = vector.load %arg10[%c0_18, %c0_19, %c0_20] : memref<9x32x8xbf16, #tpu.memory_space<vmem>>, vector<1x32x8xbf16>
    %26 = vector.shape_cast %25 : vector<1x32x8xbf16> to vector<32x8xbf16>
    %27 = arith.truncf %24 : vector<8x64xf32> to vector<8x64xbf16>
    %cst_21 = arith.constant dense<0.000000e+00> : vector<32x64xf32>
    %28 = tpu.matmul %26, %27, %cst_21 {dimension_numbers = #tpu.dot_dimension_numbers<[1], [0], [0], [1], [0, 0, 1, 1], [], []>} : vector<32x8xbf16>, vector<8x64xbf16>, vector<32x64xf32> -> vector<32x64xf32>
    %c1 = arith.constant 1 : index
    %c0_22 = arith.constant 0 : index
    %c0_23 = arith.constant 0 : index
    %29 = vector.load %arg9[%c1, %c0_22, %c0_23] : memref<9x256x64xbf16, #tpu.memory_space<vmem>>, vector<1x256x64xbf16>
    %30 = vector.shape_cast %29 : vector<1x256x64xbf16> to vector<256x64xbf16>
    %cst_24 = arith.constant dense<0.000000e+00> : vector<8x64xf32>
    %31 = tpu.matmul %21, %30, %cst_24 {dimension_numbers = #tpu.dot_dimension_numbers<[1], [0], [0], [1], [0, 0, 1, 1], [], []>} : vector<8x256xbf16>, vector<256x64xbf16>, vector<8x64xf32> -> vector<8x64xf32>
    %c1_25 = arith.constant 1 : index
    %c0_26 = arith.constant 0 : index
    %c0_27 = arith.constant 0 : index
    %32 = vector.load %arg10[%c1_25, %c0_26, %c0_27] : memref<9x32x8xbf16, #tpu.memory_space<vmem>>, vector<1x32x8xbf16>
    %33 = vector.shape_cast %32 : vector<1x32x8xbf16> to vector<32x8xbf16>
    %34 = arith.truncf %31 : vector<8x64xf32> to vector<8x64xbf16>
    %cst_28 = arith.constant dense<0.000000e+00> : vector<32x64xf32>
    %35 = tpu.matmul %33, %34, %cst_28 {dimension_numbers = #tpu.dot_dimension_numbers<[1], [0], [0], [1], [0, 0, 1, 1], [], []>} : vector<32x8xbf16>, vector<8x64xbf16>, vector<32x64xf32> -> vector<32x64xf32>
    %36 = arith.addf %28, %35 : vector<32x64xf32>
    %c2 = arith.constant 2 : index
    %c0_29 = arith.constant 0 : index
    %c0_30 = arith.constant 0 : index
    %37 = vector.load %arg9[%c2, %c0_29, %c0_30] : memref<9x256x64xbf16, #tpu.memory_space<vmem>>, vector<1x256x64xbf16>
    %38 = vector.shape_cast %37 : vector<1x256x64xbf16> to vector<256x64xbf16>
    %cst_31 = arith.constant dense<0.000000e+00> : vector<8x64xf32>
    %39 = tpu.matmul %21, %38, %cst_31 {dimension_numbers = #tpu.dot_dimension_numbers<[1], [0], [0], [1], [0, 0, 1, 1], [], []>} : vector<8x256xbf16>, vector<256x64xbf16>, vector<8x64xf32> -> vector<8x64xf32>
    %c2_32 = arith.constant 2 : index
    %c0_33 = arith.constant 0 : index
    %c0_34 = arith.constant 0 : index
    %40 = vector.load %arg10[%c2_32, %c0_33, %c0_34] : memref<9x32x8xbf16, #tpu.memory_space<vmem>>, vector<1x32x8xbf16>
    %41 = vector.shape_cast %40 : vector<1x32x8xbf16> to vector<32x8xbf16>
    %42 = arith.truncf %39 : vector<8x64xf32> to vector<8x64xbf16>
    %cst_35 = arith.constant dense<0.000000e+00> : vector<32x64xf32>
    %43 = tpu.matmul %41, %42, %cst_35 {dimension_numbers = #tpu.dot_dimension_numbers<[1], [0], [0], [1], [0, 0, 1, 1], [], []>} : vector<32x8xbf16>, vector<8x64xbf16>, vector<32x64xf32> -> vector<32x64xf32>
    %44 = arith.addf %36, %43 : vector<32x64xf32>
    %c3 = arith.constant 3 : index
    %c0_36 = arith.constant 0 : index
    %c0_37 = arith.constant 0 : index
    %45 = vector.load %arg9[%c3, %c0_36, %c0_37] : memref<9x256x64xbf16, #tpu.memory_space<vmem>>, vector<1x256x64xbf16>
    %46 = vector.shape_cast %45 : vector<1x256x64xbf16> to vector<256x64xbf16>
    %cst_38 = arith.constant dense<0.000000e+00> : vector<8x64xf32>
    %47 = tpu.matmul %21, %46, %cst_38 {dimension_numbers = #tpu.dot_dimension_numbers<[1], [0], [0], [1], [0, 0, 1, 1], [], []>} : vector<8x256xbf16>, vector<256x64xbf16>, vector<8x64xf32> -> vector<8x64xf32>
    %c3_39 = arith.constant 3 : index
    %c0_40 = arith.constant 0 : index
    %c0_41 = arith.constant 0 : index
    %48 = vector.load %arg10[%c3_39, %c0_40, %c0_41] : memref<9x32x8xbf16, #tpu.memory_space<vmem>>, vector<1x32x8xbf16>
    %49 = vector.shape_cast %48 : vector<1x32x8xbf16> to vector<32x8xbf16>
    %50 = arith.truncf %47 : vector<8x64xf32> to vector<8x64xbf16>
    %cst_42 = arith.constant dense<0.000000e+00> : vector<32x64xf32>
    %51 = tpu.matmul %49, %50, %cst_42 {dimension_numbers = #tpu.dot_dimension_numbers<[1], [0], [0], [1], [0, 0, 1, 1], [], []>} : vector<32x8xbf16>, vector<8x64xbf16>, vector<32x64xf32> -> vector<32x64xf32>
    %52 = arith.addf %44, %51 : vector<32x64xf32>
    %c4 = arith.constant 4 : index
    %c0_43 = arith.constant 0 : index
    %c0_44 = arith.constant 0 : index
    %53 = vector.load %arg9[%c4, %c0_43, %c0_44] : memref<9x256x64xbf16, #tpu.memory_space<vmem>>, vector<1x256x64xbf16>
    %54 = vector.shape_cast %53 : vector<1x256x64xbf16> to vector<256x64xbf16>
    %cst_45 = arith.constant dense<0.000000e+00> : vector<8x64xf32>
    %55 = tpu.matmul %21, %54, %cst_45 {dimension_numbers = #tpu.dot_dimension_numbers<[1], [0], [0], [1], [0, 0, 1, 1], [], []>} : vector<8x256xbf16>, vector<256x64xbf16>, vector<8x64xf32> -> vector<8x64xf32>
    %c4_46 = arith.constant 4 : index
    %c0_47 = arith.constant 0 : index
    %c0_48 = arith.constant 0 : index
    %56 = vector.load %arg10[%c4_46, %c0_47, %c0_48] : memref<9x32x8xbf16, #tpu.memory_space<vmem>>, vector<1x32x8xbf16>
    %57 = vector.shape_cast %56 : vector<1x32x8xbf16> to vector<32x8xbf16>
    %58 = arith.truncf %55 : vector<8x64xf32> to vector<8x64xbf16>
    %cst_49 = arith.constant dense<0.000000e+00> : vector<32x64xf32>
    %59 = tpu.matmul %57, %58, %cst_49 {dimension_numbers = #tpu.dot_dimension_numbers<[1], [0], [0], [1], [0, 0, 1, 1], [], []>} : vector<32x8xbf16>, vector<8x64xbf16>, vector<32x64xf32> -> vector<32x64xf32>
    %60 = arith.addf %52, %59 : vector<32x64xf32>
    %c5 = arith.constant 5 : index
    %c0_50 = arith.constant 0 : index
    %c0_51 = arith.constant 0 : index
    %61 = vector.load %arg9[%c5, %c0_50, %c0_51] : memref<9x256x64xbf16, #tpu.memory_space<vmem>>, vector<1x256x64xbf16>
    %62 = vector.shape_cast %61 : vector<1x256x64xbf16> to vector<256x64xbf16>
    %cst_52 = arith.constant dense<0.000000e+00> : vector<8x64xf32>
    %63 = tpu.matmul %21, %62, %cst_52 {dimension_numbers = #tpu.dot_dimension_numbers<[1], [0], [0], [1], [0, 0, 1, 1], [], []>} : vector<8x256xbf16>, vector<256x64xbf16>, vector<8x64xf32> -> vector<8x64xf32>
    %c5_53 = arith.constant 5 : index
    %c0_54 = arith.constant 0 : index
    %c0_55 = arith.constant 0 : index
    %64 = vector.load %arg10[%c5_53, %c0_54, %c0_55] : memref<9x32x8xbf16, #tpu.memory_space<vmem>>, vector<1x32x8xbf16>
    %65 = vector.shape_cast %64 : vector<1x32x8xbf16> to vector<32x8xbf16>
    %66 = arith.truncf %63 : vector<8x64xf32> to vector<8x64xbf16>
    %cst_56 = arith.constant dense<0.000000e+00> : vector<32x64xf32>
    %67 = tpu.matmul %65, %66, %cst_56 {dimension_numbers = #tpu.dot_dimension_numbers<[1], [0], [0], [1], [0, 0, 1, 1], [], []>} : vector<32x8xbf16>, vector<8x64xbf16>, vector<32x64xf32> -> vector<32x64xf32>
    %68 = arith.addf %60, %67 : vector<32x64xf32>
    %c6 = arith.constant 6 : index
    %c0_57 = arith.constant 0 : index
    %c0_58 = arith.constant 0 : index
    %69 = vector.load %arg9[%c6, %c0_57, %c0_58] : memref<9x256x64xbf16, #tpu.memory_space<vmem>>, vector<1x256x64xbf16>
    %70 = vector.shape_cast %69 : vector<1x256x64xbf16> to vector<256x64xbf16>
    %cst_59 = arith.constant dense<0.000000e+00> : vector<8x64xf32>
    %71 = tpu.matmul %21, %70, %cst_59 {dimension_numbers = #tpu.dot_dimension_numbers<[1], [0], [0], [1], [0, 0, 1, 1], [], []>} : vector<8x256xbf16>, vector<256x64xbf16>, vector<8x64xf32> -> vector<8x64xf32>
    %c6_60 = arith.constant 6 : index
    %c0_61 = arith.constant 0 : index
    %c0_62 = arith.constant 0 : index
    %72 = vector.load %arg10[%c6_60, %c0_61, %c0_62] : memref<9x32x8xbf16, #tpu.memory_space<vmem>>, vector<1x32x8xbf16>
    %73 = vector.shape_cast %72 : vector<1x32x8xbf16> to vector<32x8xbf16>
    %74 = arith.truncf %71 : vector<8x64xf32> to vector<8x64xbf16>
    %cst_63 = arith.constant dense<0.000000e+00> : vector<32x64xf32>
    %75 = tpu.matmul %73, %74, %cst_63 {dimension_numbers = #tpu.dot_dimension_numbers<[1], [0], [0], [1], [0, 0, 1, 1], [], []>} : vector<32x8xbf16>, vector<8x64xbf16>, vector<32x64xf32> -> vector<32x64xf32>
    %76 = arith.addf %68, %75 : vector<32x64xf32>
    %c7 = arith.constant 7 : index
    %c0_64 = arith.constant 0 : index
    %c0_65 = arith.constant 0 : index
    %77 = vector.load %arg9[%c7, %c0_64, %c0_65] : memref<9x256x64xbf16, #tpu.memory_space<vmem>>, vector<1x256x64xbf16>
    %78 = vector.shape_cast %77 : vector<1x256x64xbf16> to vector<256x64xbf16>
    %cst_66 = arith.constant dense<0.000000e+00> : vector<8x64xf32>
    %79 = tpu.matmul %21, %78, %cst_66 {dimension_numbers = #tpu.dot_dimension_numbers<[1], [0], [0], [1], [0, 0, 1, 1], [], []>} : vector<8x256xbf16>, vector<256x64xbf16>, vector<8x64xf32> -> vector<8x64xf32>
    %c7_67 = arith.constant 7 : index
    %c0_68 = arith.constant 0 : index
    %c0_69 = arith.constant 0 : index
    %80 = vector.load %arg10[%c7_67, %c0_68, %c0_69] : memref<9x32x8xbf16, #tpu.memory_space<vmem>>, vector<1x32x8xbf16>
    %81 = vector.shape_cast %80 : vector<1x32x8xbf16> to vector<32x8xbf16>
    %82 = arith.truncf %79 : vector<8x64xf32> to vector<8x64xbf16>
    %cst_70 = arith.constant dense<0.000000e+00> : vector<32x64xf32>
    %83 = tpu.matmul %81, %82, %cst_70 {dimension_numbers = #tpu.dot_dimension_numbers<[1], [0], [0], [1], [0, 0, 1, 1], [], []>} : vector<32x8xbf16>, vector<8x64xbf16>, vector<32x64xf32> -> vector<32x64xf32>
    %84 = arith.addf %76, %83 : vector<32x64xf32>
    %c8 = arith.constant 8 : index
    %c0_71 = arith.constant 0 : index
    %c0_72 = arith.constant 0 : index
    %85 = vector.load %arg9[%c8, %c0_71, %c0_72] : memref<9x256x64xbf16, #tpu.memory_space<vmem>>, vector<1x256x64xbf16>
    %86 = vector.shape_cast %85 : vector<1x256x64xbf16> to vector<256x64xbf16>
    %cst_73 = arith.constant dense<0.000000e+00> : vector<8x64xf32>
    %87 = tpu.matmul %21, %86, %cst_73 {dimension_numbers = #tpu.dot_dimension_numbers<[1], [0], [0], [1], [0, 0, 1, 1], [], []>} : vector<8x256xbf16>, vector<256x64xbf16>, vector<8x64xf32> -> vector<8x64xf32>
    %c8_74 = arith.constant 8 : index
    %c0_75 = arith.constant 0 : index
    %c0_76 = arith.constant 0 : index
    %88 = vector.load %arg10[%c8_74, %c0_75, %c0_76] : memref<9x32x8xbf16, #tpu.memory_space<vmem>>, vector<1x32x8xbf16>
    %89 = vector.shape_cast %88 : vector<1x32x8xbf16> to vector<32x8xbf16>
    %90 = arith.truncf %87 : vector<8x64xf32> to vector<8x64xbf16>
    %cst_77 = arith.constant dense<0.000000e+00> : vector<32x64xf32>
    %91 = tpu.matmul %89, %90, %cst_77 {dimension_numbers = #tpu.dot_dimension_numbers<[1], [0], [0], [1], [0, 0, 1, 1], [], []>} : vector<32x8xbf16>, vector<8x64xbf16>, vector<32x64xf32> -> vector<32x64xf32>
    %92 = arith.addf %84, %91 : vector<32x64xf32>
    %c0_78 = arith.constant 0 : index
    %c0_79 = arith.constant 0 : index
    %93 = vector.load %arg11[%c0_78, %c0_79] : memref<32x1xf32, #tpu.memory_space<vmem>>, vector<32x1xf32>
    %94 = vector.broadcast %93 : vector<32x1xf32> to vector<32x64xf32>
    %95 = arith.mulf %92, %94 : vector<32x64xf32>
    %c0_80 = arith.constant 0 : index
    %c0_81 = arith.constant 0 : index
    %96 = vector.load %arg12[%c0_80, %c0_81] : memref<32x1xf32, #tpu.memory_space<vmem>>, vector<32x1xf32>
    %97 = vector.broadcast %96 : vector<32x1xf32> to vector<32x64xf32>
    %98 = arith.addf %95, %97 : vector<32x64xf32>
    %cst_82 = arith.constant 0.000000e+00 : f32
    %99 = vector.broadcast %cst_82 : f32 to vector<32x64xf32>
    %100 = arith.maximumf %98, %99 : vector<32x64xf32>
    %101 = arith.truncf %100 : vector<32x64xf32> to vector<32x64xbf16>
    %c0_83 = arith.constant 0 : index
    %c0_84 = arith.constant 0 : index
    %c0_85 = arith.constant 0 : index
    %102 = vector.load %arg13[%c0_83, %c0_84, %c0_85] : memref<9x64x16xbf16, #tpu.memory_space<vmem>>, vector<1x64x16xbf16>
    %103 = vector.shape_cast %102 : vector<1x64x16xbf16> to vector<64x16xbf16>
    %cst_86 = arith.constant dense<0.000000e+00> : vector<32x16xf32>
    %104 = tpu.matmul %101, %103, %cst_86 {dimension_numbers = #tpu.dot_dimension_numbers<[1], [0], [0], [1], [0, 0, 1, 1], [], []>} : vector<32x64xbf16>, vector<64x16xbf16>, vector<32x16xf32> -> vector<32x16xf32>
    %c0_87 = arith.constant 0 : index
    %c0_88 = arith.constant 0 : index
    %c0_89 = arith.constant 0 : index
    %105 = vector.load %arg14[%c0_87, %c0_88, %c0_89] : memref<9x32x32xbf16, #tpu.memory_space<vmem>>, vector<1x32x32xbf16>
    %106 = vector.shape_cast %105 : vector<1x32x32xbf16> to vector<32x32xbf16>
    %107 = arith.truncf %104 : vector<32x16xf32> to vector<32x16xbf16>
    %cst_90 = arith.constant dense<0.000000e+00> : vector<32x16xf32>
    %108 = tpu.matmul %106, %107, %cst_90 {dimension_numbers = #tpu.dot_dimension_numbers<[1], [0], [0], [1], [0, 0, 1, 1], [], []>} : vector<32x32xbf16>, vector<32x16xbf16>, vector<32x16xf32> -> vector<32x16xf32>
    %c1_91 = arith.constant 1 : index
    %c0_92 = arith.constant 0 : index
    %c0_93 = arith.constant 0 : index
    %109 = vector.load %arg13[%c1_91, %c0_92, %c0_93] : memref<9x64x16xbf16, #tpu.memory_space<vmem>>, vector<1x64x16xbf16>
    %110 = vector.shape_cast %109 : vector<1x64x16xbf16> to vector<64x16xbf16>
    %cst_94 = arith.constant dense<0.000000e+00> : vector<32x16xf32>
    %111 = tpu.matmul %101, %110, %cst_94 {dimension_numbers = #tpu.dot_dimension_numbers<[1], [0], [0], [1], [0, 0, 1, 1], [], []>} : vector<32x64xbf16>, vector<64x16xbf16>, vector<32x16xf32> -> vector<32x16xf32>
    %c1_95 = arith.constant 1 : index
    %c0_96 = arith.constant 0 : index
    %c0_97 = arith.constant 0 : index
    %112 = vector.load %arg14[%c1_95, %c0_96, %c0_97] : memref<9x32x32xbf16, #tpu.memory_space<vmem>>, vector<1x32x32xbf16>
    %113 = vector.shape_cast %112 : vector<1x32x32xbf16> to vector<32x32xbf16>
    %114 = arith.truncf %111 : vector<32x16xf32> to vector<32x16xbf16>
    %cst_98 = arith.constant dense<0.000000e+00> : vector<32x16xf32>
    %115 = tpu.matmul %113, %114, %cst_98 {dimension_numbers = #tpu.dot_dimension_numbers<[1], [0], [0], [1], [0, 0, 1, 1], [], []>} : vector<32x32xbf16>, vector<32x16xbf16>, vector<32x16xf32> -> vector<32x16xf32>
    %116 = arith.addf %108, %115 : vector<32x16xf32>
    %c2_99 = arith.constant 2 : index
    %c0_100 = arith.constant 0 : index
    %c0_101 = arith.constant 0 : index
    %117 = vector.load %arg13[%c2_99, %c0_100, %c0_101] : memref<9x64x16xbf16, #tpu.memory_space<vmem>>, vector<1x64x16xbf16>
    %118 = vector.shape_cast %117 : vector<1x64x16xbf16> to vector<64x16xbf16>
    %cst_102 = arith.constant dense<0.000000e+00> : vector<32x16xf32>
    %119 = tpu.matmul %101, %118, %cst_102 {dimension_numbers = #tpu.dot_dimension_numbers<[1], [0], [0], [1], [0, 0, 1, 1], [], []>} : vector<32x64xbf16>, vector<64x16xbf16>, vector<32x16xf32> -> vector<32x16xf32>
    %c2_103 = arith.constant 2 : index
    %c0_104 = arith.constant 0 : index
    %c0_105 = arith.constant 0 : index
    %120 = vector.load %arg14[%c2_103, %c0_104, %c0_105] : memref<9x32x32xbf16, #tpu.memory_space<vmem>>, vector<1x32x32xbf16>
    %121 = vector.shape_cast %120 : vector<1x32x32xbf16> to vector<32x32xbf16>
    %122 = arith.truncf %119 : vector<32x16xf32> to vector<32x16xbf16>
    %cst_106 = arith.constant dense<0.000000e+00> : vector<32x16xf32>
    %123 = tpu.matmul %121, %122, %cst_106 {dimension_numbers = #tpu.dot_dimension_numbers<[1], [0], [0], [1], [0, 0, 1, 1], [], []>} : vector<32x32xbf16>, vector<32x16xbf16>, vector<32x16xf32> -> vector<32x16xf32>
    %124 = arith.addf %116, %123 : vector<32x16xf32>
    %c3_107 = arith.constant 3 : index
    %c0_108 = arith.constant 0 : index
    %c0_109 = arith.constant 0 : index
    %125 = vector.load %arg13[%c3_107, %c0_108, %c0_109] : memref<9x64x16xbf16, #tpu.memory_space<vmem>>, vector<1x64x16xbf16>
    %126 = vector.shape_cast %125 : vector<1x64x16xbf16> to vector<64x16xbf16>
    %cst_110 = arith.constant dense<0.000000e+00> : vector<32x16xf32>
    %127 = tpu.matmul %101, %126, %cst_110 {dimension_numbers = #tpu.dot_dimension_numbers<[1], [0], [0], [1], [0, 0, 1, 1], [], []>} : vector<32x64xbf16>, vector<64x16xbf16>, vector<32x16xf32> -> vector<32x16xf32>
    %c3_111 = arith.constant 3 : index
    %c0_112 = arith.constant 0 : index
    %c0_113 = arith.constant 0 : index
    %128 = vector.load %arg14[%c3_111, %c0_112, %c0_113] : memref<9x32x32xbf16, #tpu.memory_space<vmem>>, vector<1x32x32xbf16>
    %129 = vector.shape_cast %128 : vector<1x32x32xbf16> to vector<32x32xbf16>
    %130 = arith.truncf %127 : vector<32x16xf32> to vector<32x16xbf16>
    %cst_114 = arith.constant dense<0.000000e+00> : vector<32x16xf32>
    %131 = tpu.matmul %129, %130, %cst_114 {dimension_numbers = #tpu.dot_dimension_numbers<[1], [0], [0], [1], [0, 0, 1, 1], [], []>} : vector<32x32xbf16>, vector<32x16xbf16>, vector<32x16xf32> -> vector<32x16xf32>
    %132 = arith.addf %124, %131 : vector<32x16xf32>
    %c4_115 = arith.constant 4 : index
    %c0_116 = arith.constant 0 : index
    %c0_117 = arith.constant 0 : index
    %133 = vector.load %arg13[%c4_115, %c0_116, %c0_117] : memref<9x64x16xbf16, #tpu.memory_space<vmem>>, vector<1x64x16xbf16>
    %134 = vector.shape_cast %133 : vector<1x64x16xbf16> to vector<64x16xbf16>
    %cst_118 = arith.constant dense<0.000000e+00> : vector<32x16xf32>
    %135 = tpu.matmul %101, %134, %cst_118 {dimension_numbers = #tpu.dot_dimension_numbers<[1], [0], [0], [1], [0, 0, 1, 1], [], []>} : vector<32x64xbf16>, vector<64x16xbf16>, vector<32x16xf32> -> vector<32x16xf32>
    %c4_119 = arith.constant 4 : index
    %c0_120 = arith.constant 0 : index
    %c0_121 = arith.constant 0 : index
    %136 = vector.load %arg14[%c4_119, %c0_120, %c0_121] : memref<9x32x32xbf16, #tpu.memory_space<vmem>>, vector<1x32x32xbf16>
    %137 = vector.shape_cast %136 : vector<1x32x32xbf16> to vector<32x32xbf16>
    %138 = arith.truncf %135 : vector<32x16xf32> to vector<32x16xbf16>
    %cst_122 = arith.constant dense<0.000000e+00> : vector<32x16xf32>
    %139 = tpu.matmul %137, %138, %cst_122 {dimension_numbers = #tpu.dot_dimension_numbers<[1], [0], [0], [1], [0, 0, 1, 1], [], []>} : vector<32x32xbf16>, vector<32x16xbf16>, vector<32x16xf32> -> vector<32x16xf32>
    %140 = arith.addf %132, %139 : vector<32x16xf32>
    %c5_123 = arith.constant 5 : index
    %c0_124 = arith.constant 0 : index
    %c0_125 = arith.constant 0 : index
    %141 = vector.load %arg13[%c5_123, %c0_124, %c0_125] : memref<9x64x16xbf16, #tpu.memory_space<vmem>>, vector<1x64x16xbf16>
    %142 = vector.shape_cast %141 : vector<1x64x16xbf16> to vector<64x16xbf16>
    %cst_126 = arith.constant dense<0.000000e+00> : vector<32x16xf32>
    %143 = tpu.matmul %101, %142, %cst_126 {dimension_numbers = #tpu.dot_dimension_numbers<[1], [0], [0], [1], [0, 0, 1, 1], [], []>} : vector<32x64xbf16>, vector<64x16xbf16>, vector<32x16xf32> -> vector<32x16xf32>
    %c5_127 = arith.constant 5 : index
    %c0_128 = arith.constant 0 : index
    %c0_129 = arith.constant 0 : index
    %144 = vector.load %arg14[%c5_127, %c0_128, %c0_129] : memref<9x32x32xbf16, #tpu.memory_space<vmem>>, vector<1x32x32xbf16>
    %145 = vector.shape_cast %144 : vector<1x32x32xbf16> to vector<32x32xbf16>
    %146 = arith.truncf %143 : vector<32x16xf32> to vector<32x16xbf16>
    %cst_130 = arith.constant dense<0.000000e+00> : vector<32x16xf32>
    %147 = tpu.matmul %145, %146, %cst_130 {dimension_numbers = #tpu.dot_dimension_numbers<[1], [0], [0], [1], [0, 0, 1, 1], [], []>} : vector<32x32xbf16>, vector<32x16xbf16>, vector<32x16xf32> -> vector<32x16xf32>
    %148 = arith.addf %140, %147 : vector<32x16xf32>
    %c6_131 = arith.constant 6 : index
    %c0_132 = arith.constant 0 : index
    %c0_133 = arith.constant 0 : index
    %149 = vector.load %arg13[%c6_131, %c0_132, %c0_133] : memref<9x64x16xbf16, #tpu.memory_space<vmem>>, vector<1x64x16xbf16>
    %150 = vector.shape_cast %149 : vector<1x64x16xbf16> to vector<64x16xbf16>
    %cst_134 = arith.constant dense<0.000000e+00> : vector<32x16xf32>
    %151 = tpu.matmul %101, %150, %cst_134 {dimension_numbers = #tpu.dot_dimension_numbers<[1], [0], [0], [1], [0, 0, 1, 1], [], []>} : vector<32x64xbf16>, vector<64x16xbf16>, vector<32x16xf32> -> vector<32x16xf32>
    %c6_135 = arith.constant 6 : index
    %c0_136 = arith.constant 0 : index
    %c0_137 = arith.constant 0 : index
    %152 = vector.load %arg14[%c6_135, %c0_136, %c0_137] : memref<9x32x32xbf16, #tpu.memory_space<vmem>>, vector<1x32x32xbf16>
    %153 = vector.shape_cast %152 : vector<1x32x32xbf16> to vector<32x32xbf16>
    %154 = arith.truncf %151 : vector<32x16xf32> to vector<32x16xbf16>
    %cst_138 = arith.constant dense<0.000000e+00> : vector<32x16xf32>
    %155 = tpu.matmul %153, %154, %cst_138 {dimension_numbers = #tpu.dot_dimension_numbers<[1], [0], [0], [1], [0, 0, 1, 1], [], []>} : vector<32x32xbf16>, vector<32x16xbf16>, vector<32x16xf32> -> vector<32x16xf32>
    %156 = arith.addf %148, %155 : vector<32x16xf32>
    %c7_139 = arith.constant 7 : index
    %c0_140 = arith.constant 0 : index
    %c0_141 = arith.constant 0 : index
    %157 = vector.load %arg13[%c7_139, %c0_140, %c0_141] : memref<9x64x16xbf16, #tpu.memory_space<vmem>>, vector<1x64x16xbf16>
    %158 = vector.shape_cast %157 : vector<1x64x16xbf16> to vector<64x16xbf16>
    %cst_142 = arith.constant dense<0.000000e+00> : vector<32x16xf32>
    %159 = tpu.matmul %101, %158, %cst_142 {dimension_numbers = #tpu.dot_dimension_numbers<[1], [0], [0], [1], [0, 0, 1, 1], [], []>} : vector<32x64xbf16>, vector<64x16xbf16>, vector<32x16xf32> -> vector<32x16xf32>
    %c7_143 = arith.constant 7 : index
    %c0_144 = arith.constant 0 : index
    %c0_145 = arith.constant 0 : index
    %160 = vector.load %arg14[%c7_143, %c0_144, %c0_145] : memref<9x32x32xbf16, #tpu.memory_space<vmem>>, vector<1x32x32xbf16>
    %161 = vector.shape_cast %160 : vector<1x32x32xbf16> to vector<32x32xbf16>
    %162 = arith.truncf %159 : vector<32x16xf32> to vector<32x16xbf16>
    %cst_146 = arith.constant dense<0.000000e+00> : vector<32x16xf32>
    %163 = tpu.matmul %161, %162, %cst_146 {dimension_numbers = #tpu.dot_dimension_numbers<[1], [0], [0], [1], [0, 0, 1, 1], [], []>} : vector<32x32xbf16>, vector<32x16xbf16>, vector<32x16xf32> -> vector<32x16xf32>
    %164 = arith.addf %156, %163 : vector<32x16xf32>
    %c8_147 = arith.constant 8 : index
    %c0_148 = arith.constant 0 : index
    %c0_149 = arith.constant 0 : index
    %165 = vector.load %arg13[%c8_147, %c0_148, %c0_149] : memref<9x64x16xbf16, #tpu.memory_space<vmem>>, vector<1x64x16xbf16>
    %166 = vector.shape_cast %165 : vector<1x64x16xbf16> to vector<64x16xbf16>
    %cst_150 = arith.constant dense<0.000000e+00> : vector<32x16xf32>
    %167 = tpu.matmul %101, %166, %cst_150 {dimension_numbers = #tpu.dot_dimension_numbers<[1], [0], [0], [1], [0, 0, 1, 1], [], []>} : vector<32x64xbf16>, vector<64x16xbf16>, vector<32x16xf32> -> vector<32x16xf32>
    %c8_151 = arith.constant 8 : index
    %c0_152 = arith.constant 0 : index
    %c0_153 = arith.constant 0 : index
    %168 = vector.load %arg14[%c8_151, %c0_152, %c0_153] : memref<9x32x32xbf16, #tpu.memory_space<vmem>>, vector<1x32x32xbf16>
    %169 = vector.shape_cast %168 : vector<1x32x32xbf16> to vector<32x32xbf16>
    %170 = arith.truncf %167 : vector<32x16xf32> to vector<32x16xbf16>
    %cst_154 = arith.constant dense<0.000000e+00> : vector<32x16xf32>
    %171 = tpu.matmul %169, %170, %cst_154 {dimension_numbers = #tpu.dot_dimension_numbers<[1], [0], [0], [1], [0, 0, 1, 1], [], []>} : vector<32x32xbf16>, vector<32x16xbf16>, vector<32x16xf32> -> vector<32x16xf32>
    %172 = arith.addf %164, %171 : vector<32x16xf32>
    %c0_155 = arith.constant 0 : index
    %c0_156 = arith.constant 0 : index
    %173 = vector.load %arg15[%c0_155, %c0_156] : memref<32x1xf32, #tpu.memory_space<vmem>>, vector<32x1xf32>
    %174 = vector.broadcast %173 : vector<32x1xf32> to vector<32x16xf32>
    %175 = arith.mulf %172, %174 : vector<32x16xf32>
    %c0_157 = arith.constant 0 : index
    %c0_158 = arith.constant 0 : index
    %176 = vector.load %arg16[%c0_157, %c0_158] : memref<32x1xf32, #tpu.memory_space<vmem>>, vector<32x1xf32>
    %177 = vector.broadcast %176 : vector<32x1xf32> to vector<32x16xf32>
    %178 = arith.addf %175, %177 : vector<32x16xf32>
    %cst_159 = arith.constant 0.000000e+00 : f32
    %179 = vector.broadcast %cst_159 : f32 to vector<32x16xf32>
    %180 = arith.maximumf %178, %179 : vector<32x16xf32>
    %181 = arith.truncf %180 : vector<32x16xf32> to vector<32x16xbf16>
    %c0_160 = arith.constant 0 : index
    %c0_161 = arith.constant 0 : index
    %c0_162 = arith.constant 0 : index
    %182 = vector.load %arg17[%c0_160, %c0_161, %c0_162] : memref<9x16x64xbf16, #tpu.memory_space<vmem>>, vector<1x16x64xbf16>
    %183 = vector.shape_cast %182 : vector<1x16x64xbf16> to vector<16x64xbf16>
    %cst_163 = arith.constant dense<0.000000e+00> : vector<32x64xf32>
    %184 = tpu.matmul %181, %183, %cst_163 {dimension_numbers = #tpu.dot_dimension_numbers<[1], [0], [0], [1], [0, 0, 1, 1], [], []>} : vector<32x16xbf16>, vector<16x64xbf16>, vector<32x64xf32> -> vector<32x64xf32>
    %c0_164 = arith.constant 0 : index
    %c0_165 = arith.constant 0 : index
    %c0_166 = arith.constant 0 : index
    %185 = vector.load %arg18[%c0_164, %c0_165, %c0_166] : memref<9x8x32xbf16, #tpu.memory_space<vmem>>, vector<1x8x32xbf16>
    %186 = vector.shape_cast %185 : vector<1x8x32xbf16> to vector<8x32xbf16>
    %187 = arith.truncf %184 : vector<32x64xf32> to vector<32x64xbf16>
    %cst_167 = arith.constant dense<0.000000e+00> : vector<8x64xf32>
    %188 = tpu.matmul %186, %187, %cst_167 {dimension_numbers = #tpu.dot_dimension_numbers<[1], [0], [0], [1], [0, 0, 1, 1], [], []>} : vector<8x32xbf16>, vector<32x64xbf16>, vector<8x64xf32> -> vector<8x64xf32>
    %c1_168 = arith.constant 1 : index
    %c0_169 = arith.constant 0 : index
    %c0_170 = arith.constant 0 : index
    %189 = vector.load %arg17[%c1_168, %c0_169, %c0_170] : memref<9x16x64xbf16, #tpu.memory_space<vmem>>, vector<1x16x64xbf16>
    %190 = vector.shape_cast %189 : vector<1x16x64xbf16> to vector<16x64xbf16>
    %cst_171 = arith.constant dense<0.000000e+00> : vector<32x64xf32>
    %191 = tpu.matmul %181, %190, %cst_171 {dimension_numbers = #tpu.dot_dimension_numbers<[1], [0], [0], [1], [0, 0, 1, 1], [], []>} : vector<32x16xbf16>, vector<16x64xbf16>, vector<32x64xf32> -> vector<32x64xf32>
    %c1_172 = arith.constant 1 : index
    %c0_173 = arith.constant 0 : index
    %c0_174 = arith.constant 0 : index
    %192 = vector.load %arg18[%c1_172, %c0_173, %c0_174] : memref<9x8x32xbf16, #tpu.memory_space<vmem>>, vector<1x8x32xbf16>
    %193 = vector.shape_cast %192 : vector<1x8x32xbf16> to vector<8x32xbf16>
    %194 = arith.truncf %191 : vector<32x64xf32> to vector<32x64xbf16>
    %cst_175 = arith.constant dense<0.000000e+00> : vector<8x64xf32>
    %195 = tpu.matmul %193, %194, %cst_175 {dimension_numbers = #tpu.dot_dimension_numbers<[1], [0], [0], [1], [0, 0, 1, 1], [], []>} : vector<8x32xbf16>, vector<32x64xbf16>, vector<8x64xf32> -> vector<8x64xf32>
    %196 = arith.addf %188, %195 : vector<8x64xf32>
    %c2_176 = arith.constant 2 : index
    %c0_177 = arith.constant 0 : index
    %c0_178 = arith.constant 0 : index
    %197 = vector.load %arg17[%c2_176, %c0_177, %c0_178] : memref<9x16x64xbf16, #tpu.memory_space<vmem>>, vector<1x16x64xbf16>
    %198 = vector.shape_cast %197 : vector<1x16x64xbf16> to vector<16x64xbf16>
    %cst_179 = arith.constant dense<0.000000e+00> : vector<32x64xf32>
    %199 = tpu.matmul %181, %198, %cst_179 {dimension_numbers = #tpu.dot_dimension_numbers<[1], [0], [0], [1], [0, 0, 1, 1], [], []>} : vector<32x16xbf16>, vector<16x64xbf16>, vector<32x64xf32> -> vector<32x64xf32>
    %c2_180 = arith.constant 2 : index
    %c0_181 = arith.constant 0 : index
    %c0_182 = arith.constant 0 : index
    %200 = vector.load %arg18[%c2_180, %c0_181, %c0_182] : memref<9x8x32xbf16, #tpu.memory_space<vmem>>, vector<1x8x32xbf16>
    %201 = vector.shape_cast %200 : vector<1x8x32xbf16> to vector<8x32xbf16>
    %202 = arith.truncf %199 : vector<32x64xf32> to vector<32x64xbf16>
    %cst_183 = arith.constant dense<0.000000e+00> : vector<8x64xf32>
    %203 = tpu.matmul %201, %202, %cst_183 {dimension_numbers = #tpu.dot_dimension_numbers<[1], [0], [0], [1], [0, 0, 1, 1], [], []>} : vector<8x32xbf16>, vector<32x64xbf16>, vector<8x64xf32> -> vector<8x64xf32>
    %204 = arith.addf %196, %203 : vector<8x64xf32>
    %c3_184 = arith.constant 3 : index
    %c0_185 = arith.constant 0 : index
    %c0_186 = arith.constant 0 : index
    %205 = vector.load %arg17[%c3_184, %c0_185, %c0_186] : memref<9x16x64xbf16, #tpu.memory_space<vmem>>, vector<1x16x64xbf16>
    %206 = vector.shape_cast %205 : vector<1x16x64xbf16> to vector<16x64xbf16>
    %cst_187 = arith.constant dense<0.000000e+00> : vector<32x64xf32>
    %207 = tpu.matmul %181, %206, %cst_187 {dimension_numbers = #tpu.dot_dimension_numbers<[1], [0], [0], [1], [0, 0, 1, 1], [], []>} : vector<32x16xbf16>, vector<16x64xbf16>, vector<32x64xf32> -> vector<32x64xf32>
    %c3_188 = arith.constant 3 : index
    %c0_189 = arith.constant 0 : index
    %c0_190 = arith.constant 0 : index
    %208 = vector.load %arg18[%c3_188, %c0_189, %c0_190] : memref<9x8x32xbf16, #tpu.memory_space<vmem>>, vector<1x8x32xbf16>
    %209 = vector.shape_cast %208 : vector<1x8x32xbf16> to vector<8x32xbf16>
    %210 = arith.truncf %207 : vector<32x64xf32> to vector<32x64xbf16>
    %cst_191 = arith.constant dense<0.000000e+00> : vector<8x64xf32>
    %211 = tpu.matmul %209, %210, %cst_191 {dimension_numbers = #tpu.dot_dimension_numbers<[1], [0], [0], [1], [0, 0, 1, 1], [], []>} : vector<8x32xbf16>, vector<32x64xbf16>, vector<8x64xf32> -> vector<8x64xf32>
    %212 = arith.addf %204, %211 : vector<8x64xf32>
    %c4_192 = arith.constant 4 : index
    %c0_193 = arith.constant 0 : index
    %c0_194 = arith.constant 0 : index
    %213 = vector.load %arg17[%c4_192, %c0_193, %c0_194] : memref<9x16x64xbf16, #tpu.memory_space<vmem>>, vector<1x16x64xbf16>
    %214 = vector.shape_cast %213 : vector<1x16x64xbf16> to vector<16x64xbf16>
    %cst_195 = arith.constant dense<0.000000e+00> : vector<32x64xf32>
    %215 = tpu.matmul %181, %214, %cst_195 {dimension_numbers = #tpu.dot_dimension_numbers<[1], [0], [0], [1], [0, 0, 1, 1], [], []>} : vector<32x16xbf16>, vector<16x64xbf16>, vector<32x64xf32> -> vector<32x64xf32>
    %c4_196 = arith.constant 4 : index
    %c0_197 = arith.constant 0 : index
    %c0_198 = arith.constant 0 : index
    %216 = vector.load %arg18[%c4_196, %c0_197, %c0_198] : memref<9x8x32xbf16, #tpu.memory_space<vmem>>, vector<1x8x32xbf16>
    %217 = vector.shape_cast %216 : vector<1x8x32xbf16> to vector<8x32xbf16>
    %218 = arith.truncf %215 : vector<32x64xf32> to vector<32x64xbf16>
    %cst_199 = arith.constant dense<0.000000e+00> : vector<8x64xf32>
    %219 = tpu.matmul %217, %218, %cst_199 {dimension_numbers = #tpu.dot_dimension_numbers<[1], [0], [0], [1], [0, 0, 1, 1], [], []>} : vector<8x32xbf16>, vector<32x64xbf16>, vector<8x64xf32> -> vector<8x64xf32>
    %220 = arith.addf %212, %219 : vector<8x64xf32>
    %c5_200 = arith.constant 5 : index
    %c0_201 = arith.constant 0 : index
    %c0_202 = arith.constant 0 : index
    %221 = vector.load %arg17[%c5_200, %c0_201, %c0_202] : memref<9x16x64xbf16, #tpu.memory_space<vmem>>, vector<1x16x64xbf16>
    %222 = vector.shape_cast %221 : vector<1x16x64xbf16> to vector<16x64xbf16>
    %cst_203 = arith.constant dense<0.000000e+00> : vector<32x64xf32>
    %223 = tpu.matmul %181, %222, %cst_203 {dimension_numbers = #tpu.dot_dimension_numbers<[1], [0], [0], [1], [0, 0, 1, 1], [], []>} : vector<32x16xbf16>, vector<16x64xbf16>, vector<32x64xf32> -> vector<32x64xf32>
    %c5_204 = arith.constant 5 : index
    %c0_205 = arith.constant 0 : index
    %c0_206 = arith.constant 0 : index
    %224 = vector.load %arg18[%c5_204, %c0_205, %c0_206] : memref<9x8x32xbf16, #tpu.memory_space<vmem>>, vector<1x8x32xbf16>
    %225 = vector.shape_cast %224 : vector<1x8x32xbf16> to vector<8x32xbf16>
    %226 = arith.truncf %223 : vector<32x64xf32> to vector<32x64xbf16>
    %cst_207 = arith.constant dense<0.000000e+00> : vector<8x64xf32>
    %227 = tpu.matmul %225, %226, %cst_207 {dimension_numbers = #tpu.dot_dimension_numbers<[1], [0], [0], [1], [0, 0, 1, 1], [], []>} : vector<8x32xbf16>, vector<32x64xbf16>, vector<8x64xf32> -> vector<8x64xf32>
    %228 = arith.addf %220, %227 : vector<8x64xf32>
    %c6_208 = arith.constant 6 : index
    %c0_209 = arith.constant 0 : index
    %c0_210 = arith.constant 0 : index
    %229 = vector.load %arg17[%c6_208, %c0_209, %c0_210] : memref<9x16x64xbf16, #tpu.memory_space<vmem>>, vector<1x16x64xbf16>
    %230 = vector.shape_cast %229 : vector<1x16x64xbf16> to vector<16x64xbf16>
    %cst_211 = arith.constant dense<0.000000e+00> : vector<32x64xf32>
    %231 = tpu.matmul %181, %230, %cst_211 {dimension_numbers = #tpu.dot_dimension_numbers<[1], [0], [0], [1], [0, 0, 1, 1], [], []>} : vector<32x16xbf16>, vector<16x64xbf16>, vector<32x64xf32> -> vector<32x64xf32>
    %c6_212 = arith.constant 6 : index
    %c0_213 = arith.constant 0 : index
    %c0_214 = arith.constant 0 : index
    %232 = vector.load %arg18[%c6_212, %c0_213, %c0_214] : memref<9x8x32xbf16, #tpu.memory_space<vmem>>, vector<1x8x32xbf16>
    %233 = vector.shape_cast %232 : vector<1x8x32xbf16> to vector<8x32xbf16>
    %234 = arith.truncf %231 : vector<32x64xf32> to vector<32x64xbf16>
    %cst_215 = arith.constant dense<0.000000e+00> : vector<8x64xf32>
    %235 = tpu.matmul %233, %234, %cst_215 {dimension_numbers = #tpu.dot_dimension_numbers<[1], [0], [0], [1], [0, 0, 1, 1], [], []>} : vector<8x32xbf16>, vector<32x64xbf16>, vector<8x64xf32> -> vector<8x64xf32>
    %236 = arith.addf %228, %235 : vector<8x64xf32>
    %c7_216 = arith.constant 7 : index
    %c0_217 = arith.constant 0 : index
    %c0_218 = arith.constant 0 : index
    %237 = vector.load %arg17[%c7_216, %c0_217, %c0_218] : memref<9x16x64xbf16, #tpu.memory_space<vmem>>, vector<1x16x64xbf16>
    %238 = vector.shape_cast %237 : vector<1x16x64xbf16> to vector<16x64xbf16>
    %cst_219 = arith.constant dense<0.000000e+00> : vector<32x64xf32>
    %239 = tpu.matmul %181, %238, %cst_219 {dimension_numbers = #tpu.dot_dimension_numbers<[1], [0], [0], [1], [0, 0, 1, 1], [], []>} : vector<32x16xbf16>, vector<16x64xbf16>, vector<32x64xf32> -> vector<32x64xf32>
    %c7_220 = arith.constant 7 : index
    %c0_221 = arith.constant 0 : index
    %c0_222 = arith.constant 0 : index
    %240 = vector.load %arg18[%c7_220, %c0_221, %c0_222] : memref<9x8x32xbf16, #tpu.memory_space<vmem>>, vector<1x8x32xbf16>
    %241 = vector.shape_cast %240 : vector<1x8x32xbf16> to vector<8x32xbf16>
    %242 = arith.truncf %239 : vector<32x64xf32> to vector<32x64xbf16>
    %cst_223 = arith.constant dense<0.000000e+00> : vector<8x64xf32>
    %243 = tpu.matmul %241, %242, %cst_223 {dimension_numbers = #tpu.dot_dimension_numbers<[1], [0], [0], [1], [0, 0, 1, 1], [], []>} : vector<8x32xbf16>, vector<32x64xbf16>, vector<8x64xf32> -> vector<8x64xf32>
    %244 = arith.addf %236, %243 : vector<8x64xf32>
    %c8_224 = arith.constant 8 : index
    %c0_225 = arith.constant 0 : index
    %c0_226 = arith.constant 0 : index
    %245 = vector.load %arg17[%c8_224, %c0_225, %c0_226] : memref<9x16x64xbf16, #tpu.memory_space<vmem>>, vector<1x16x64xbf16>
    %246 = vector.shape_cast %245 : vector<1x16x64xbf16> to vector<16x64xbf16>
    %cst_227 = arith.constant dense<0.000000e+00> : vector<32x64xf32>
    %247 = tpu.matmul %181, %246, %cst_227 {dimension_numbers = #tpu.dot_dimension_numbers<[1], [0], [0], [1], [0, 0, 1, 1], [], []>} : vector<32x16xbf16>, vector<16x64xbf16>, vector<32x64xf32> -> vector<32x64xf32>
    %c8_228 = arith.constant 8 : index
    %c0_229 = arith.constant 0 : index
    %c0_230 = arith.constant 0 : index
    %248 = vector.load %arg18[%c8_228, %c0_229, %c0_230] : memref<9x8x32xbf16, #tpu.memory_space<vmem>>, vector<1x8x32xbf16>
    %249 = vector.shape_cast %248 : vector<1x8x32xbf16> to vector<8x32xbf16>
    %250 = arith.truncf %247 : vector<32x64xf32> to vector<32x64xbf16>
    %cst_231 = arith.constant dense<0.000000e+00> : vector<8x64xf32>
    %251 = tpu.matmul %249, %250, %cst_231 {dimension_numbers = #tpu.dot_dimension_numbers<[1], [0], [0], [1], [0, 0, 1, 1], [], []>} : vector<8x32xbf16>, vector<32x64xbf16>, vector<8x64xf32> -> vector<8x64xf32>
    %252 = arith.addf %244, %251 : vector<8x64xf32>
    %c0_232 = arith.constant 0 : index
    %c0_233 = arith.constant 0 : index
    %c0_234 = arith.constant 0 : index
    %253 = vector.load %arg2[%c0_232, %c0_233, %c0_234] : memref<1x8x1xf32, #tpu.memory_space<vmem>>, vector<1x8x1xf32>
    %254 = vector.shape_cast %253 : vector<1x8x1xf32> to vector<8x1xf32>
    %255 = vector.broadcast %254 : vector<8x1xf32> to vector<8x64xf32>
    %256 = arith.mulf %252, %255 : vector<8x64xf32>
    %c0_235 = arith.constant 0 : index
    %c0_236 = arith.constant 0 : index
    %c0_237 = arith.constant 0 : index
    %257 = vector.load %arg3[%c0_235, %c0_236, %c0_237] : memref<1x8x1xf32, #tpu.memory_space<vmem>>, vector<1x8x1xf32>
    %258 = vector.shape_cast %257 : vector<1x8x1xf32> to vector<8x1xf32>
    %259 = vector.broadcast %258 : vector<8x1xf32> to vector<8x64xf32>
    %260 = arith.addf %256, %259 : vector<8x64xf32>
    %cst_238 = arith.constant 0.000000e+00 : f32
    %261 = vector.broadcast %cst_238 : f32 to vector<8x64xf32>
    %262 = arith.maximumf %260, %261 : vector<8x64xf32>
    %263 = arith.truncf %262 : vector<8x64xf32> to vector<8x64xbf16>
    %c0_239 = arith.constant 0 : index
    %c0_240 = arith.constant 0 : index
    %264 = vector.load %arg20[%c0_239, %c0_240] : memref<64x256xbf16, #tpu.memory_space<vmem>>, vector<64x256xbf16>
    %cst_241 = arith.constant dense<0.000000e+00> : vector<8x256xf32>
    %265 = tpu.matmul %263, %264, %cst_241 {dimension_numbers = #tpu.dot_dimension_numbers<[1], [0], [0], [1], [0, 0, 1, 1], [], []>} : vector<8x64xbf16>, vector<64x256xbf16>, vector<8x256xf32> -> vector<8x256xf32>
    %c0_242 = arith.constant 0 : index
    %c0_243 = arith.constant 0 : index
    %266 = vector.load %arg19[%c0_242, %c0_243] : memref<16x8xbf16, #tpu.memory_space<vmem>>, vector<16x8xbf16>
    %267 = arith.truncf %265 : vector<8x256xf32> to vector<8x256xbf16>
    %cst_244 = arith.constant dense<0.000000e+00> : vector<16x256xf32>
    %268 = tpu.matmul %266, %267, %cst_244 {dimension_numbers = #tpu.dot_dimension_numbers<[1], [0], [0], [1], [0, 0, 1, 1], [], []>} : vector<16x8xbf16>, vector<8x256xbf16>, vector<16x256xf32> -> vector<16x256xf32>
    %269 = arith.addf %268, %1 : vector<16x256xf32>
    %c0_245 = arith.constant 0 : index
    %c0_246 = arith.constant 0 : index
    %c0_247 = arith.constant 0 : index
    %270 = vector.load %arg21[%c0_245, %c0_246, %c0_247] : memref<1x16x256xf32, #tpu.memory_space<vmem>>, vector<1x16x256xf32>
    %271 = vector.shape_cast %270 : vector<1x16x256xf32> to vector<16x256xf32>
    %272 = vector.shape_cast %269 : vector<16x256xf32> to vector<1x16x256xf32>
    tpu.vector_store %arg21[%c0_245, %c0_246, %c0_247], %272 {strides = array<i32>} : memref<1x16x256xf32, #tpu.memory_space<vmem>>, vector<1x16x256xf32>,
    return
  }
  func.func @transform_0(%arg0: i32) -> (i32, i32, i32) {
    %c0_i32 = arith.constant 0 : i32
    %c0_i32_0 = arith.constant 0 : i32
    %c0_i32_1 = arith.constant 0 : i32
    return %arg0, %c0_i32, %c0_i32_0 : i32, i32, i32
  }
  func.func @transform_1(%arg0: i32) -> (i32, i32, i32) {
    %c0_i32 = arith.constant 0 : i32
    %c0_i32_0 = arith.constant 0 : i32
    %c0_i32_1 = arith.constant 0 : i32
    return %arg0, %c0_i32, %c0_i32_0 : i32, i32, i32
  }
  func.func @transform_2(%arg0: i32) -> (i32, i32, i32) {
    %c0_i32 = arith.constant 0 : i32
    %c0_i32_0 = arith.constant 0 : i32
    %c0_i32_1 = arith.constant 0 : i32
    return %arg0, %c0_i32, %c0_i32_0 : i32, i32, i32
  }
  func.func @transform_3(%arg0: i32) -> (i32, i32) {
    %c0_i32 = arith.constant 0 : i32
    %c0_i32_0 = arith.constant 0 : i32
    %c0_i32_1 = arith.constant 0 : i32
    return %c0_i32, %c0_i32_0 : i32, i32
  }
  func.func @transform_4(%arg0: i32) -> (i32, i32) {
    %c0_i32 = arith.constant 0 : i32
    %c0_i32_0 = arith.constant 0 : i32
    %c0_i32_1 = arith.constant 0 : i32
    return %c0_i32, %c0_i32_0 : i32, i32
  }
  func.func @transform_5(%arg0: i32) -> (i32, i32) {
    %c0_i32 = arith.constant 0 : i32
    %c0_i32_0 = arith.constant 0 : i32
    %c0_i32_1 = arith.constant 0 : i32
    return %c0_i32, %c0_i32_0 : i32, i32
  }
  func.func @transform_6(%arg0: i32) -> (i32, i32) {
    %c0_i32 = arith.constant 0 : i32
    %c0_i32_0 = arith.constant 0 : i32
    %c0_i32_1 = arith.constant 0 : i32
    return %c0_i32, %c0_i32_0 : i32, i32
  }
  func.func @transform_7(%arg0: i32) -> (i32, i32) {
    %c0_i32 = arith.constant 0 : i32
    %c0_i32_0 = arith.constant 0 : i32
    %c0_i32_1 = arith.constant 0 : i32
    return %c0_i32, %c0_i32_0 : i32, i32
  }
  func.func @transform_8(%arg0: i32) -> (i32, i32, i32) {
    %c0_i32 = arith.constant 0 : i32
    %c0_i32_0 = arith.constant 0 : i32
    %c0_i32_1 = arith.constant 0 : i32
    %c0_i32_2 = arith.constant 0 : i32
    return %c0_i32, %c0_i32_0, %c0_i32_1 : i32, i32, i32
  }
  func.func @transform_9(%arg0: i32) -> (i32, i32, i32) {
    %c0_i32 = arith.constant 0 : i32
    %c0_i32_0 = arith.constant 0 : i32
    %c0_i32_1 = arith.constant 0 : i32
    %c0_i32_2 = arith.constant 0 : i32
    return %c0_i32, %c0_i32_0, %c0_i32_1 : i32, i32, i32
  }
  func.func @transform_10(%arg0: i32) -> (i32, i32) {
    %c0_i32 = arith.constant 0 : i32
    %c0_i32_0 = arith.constant 0 : i32
    %c0_i32_1 = arith.constant 0 : i32
    return %c0_i32, %c0_i32_0 : i32, i32
  }
  func.func @transform_11(%arg0: i32) -> (i32, i32) {
    %c0_i32 = arith.constant 0 : i32
    %c0_i32_0 = arith.constant 0 : i32
    %c0_i32_1 = arith.constant 0 : i32
    return %c0_i32, %c0_i32_0 : i32, i32
  }
  func.func @transform_12(%arg0: i32) -> (i32, i32, i32) {
    %c0_i32 = arith.constant 0 : i32
    %c0_i32_0 = arith.constant 0 : i32
    %c0_i32_1 = arith.constant 0 : i32
    %c0_i32_2 = arith.constant 0 : i32
    return %c0_i32, %c0_i32_0, %c0_i32_1 : i32, i32, i32
  }
  func.func @transform_13(%arg0: i32) -> (i32, i32, i32) {
    %c0_i32 = arith.constant 0 : i32
    %c0_i32_0 = arith.constant 0 : i32
    %c0_i32_1 = arith.constant 0 : i32
    %c0_i32_2 = arith.constant 0 : i32
    return %c0_i32, %c0_i32_0, %c0_i32_1 : i32, i32, i32
  }
  func.func @transform_14(%arg0: i32) -> (i32, i32) {
    %c0_i32 = arith.constant 0 : i32
    %c0_i32_0 = arith.constant 0 : i32
    %c0_i32_1 = arith.constant 0 : i32
    return %c0_i32, %c0_i32_0 : i32, i32
  }
  func.func @transform_15(%arg0: i32) -> (i32, i32) {
    %c0_i32 = arith.constant 0 : i32
    %c0_i32_0 = arith.constant 0 : i32
    %c0_i32_1 = arith.constant 0 : i32
    return %c0_i32, %c0_i32_0 : i32, i32
  }
  func.func @transform_16(%arg0: i32) -> (i32, i32, i32) {
    %c0_i32 = arith.constant 0 : i32
    %c0_i32_0 = arith.constant 0 : i32
    %c0_i32_1 = arith.constant 0 : i32
    %c0_i32_2 = arith.constant 0 : i32
    return %c0_i32, %c0_i32_0, %c0_i32_1 : i32, i32, i32
  }
  func.func @transform_17(%arg0: i32) -> (i32, i32, i32) {
    %c0_i32 = arith.constant 0 : i32
    %c0_i32_0 = arith.constant 0 : i32
    %c0_i32_1 = arith.constant 0 : i32
    %c0_i32_2 = arith.constant 0 : i32
    return %c0_i32, %c0_i32_0, %c0_i32_1 : i32, i32, i32
  }
  func.func @transform_18(%arg0: i32) -> (i32, i32) {
    %c0_i32 = arith.constant 0 : i32
    %c0_i32_0 = arith.constant 0 : i32
    %c0_i32_1 = arith.constant 0 : i32
    return %c0_i32, %c0_i32_0 : i32, i32
  }
  func.func @transform_19(%arg0: i32) -> (i32, i32) {
    %c0_i32 = arith.constant 0 : i32
    %c0_i32_0 = arith.constant 0 : i32
    %c0_i32_1 = arith.constant 0 : i32
    return %c0_i32, %c0_i32_0 : i32, i32
  }
  func.func @transform_20(%arg0: i32) -> (i32, i32, i32) {
    %c0_i32 = arith.constant 0 : i32
    %c0_i32_0 = arith.constant 0 : i32
    %c0_i32_1 = arith.constant 0 : i32
    return %arg0, %c0_i32, %c0_i32_0 : i32, i32, i32
  }
}

</mosaic_0001>

<bundles_post_ra>
// kernel: bottleneck_forward.1
= control target key start
LH: loop header
LB: loop body
LE: loop exit
PB: predicated region body
PF: predicated region fallthrough
CT: control target
= control target key end

     0   :  { %s8723_s0 = inlined_call_operand.vmem [shape: f32[2,16,256], index: 0, kind: input, shape index: {}]   ;;  %s8724_s1 = inlined_call_operand.vmem [shape: f32[2,8,1], index: 1, kind: input, shape index: {}]   ;;  %s8725_s2 = inlined_call_operand.vmem [shape: f32[2,8,1], index: 2, kind: input, shape index: {}]   ;;  %s8726_s3 = inlined_call_operand.vmem [shape: f32[16,1], index: 3, kind: input, shape index: {}]   ;;  %s8727_s4 = inlined_call_operand.vmem [shape: f32[16,1], index: 4, kind: input, shape index: {}]   ;;  %s8728_s5 = inlined_call_operand.vmem [shape: bf16[8,16], index: 5, kind: input, shape index: {}]   ;;  %s8729_s6 = inlined_call_operand.vmem [shape: f32[8,1], index: 6, kind: input, shape index: {}]   ;;  %s8730_s7 = inlined_call_operand.vmem [shape: f32[8,1], index: 7, kind: input, shape index: {}]   ;;  %s8731_s8 = inlined_call_operand.vmem [shape: bf16[9,256,64], index: 8, kind: input, shape index: {}]   ;;  %s8732_s9 = inlined_call_operand.vmem [shape: bf16[9,32,8], index: 9, kind: input, shape index: {}]   ;;  %s8733_s10 = inlined_call_operand.vmem [shape: f32[32,1], index: 10, kind: input, shape index: {}]   ;;  %s8734_s11 = inlined_call_operand.vmem [shape: f32[32,1], index: 11, kind: input, shape index: {}]   ;;  %s8735_s12 = inlined_call_operand.vmem [shape: bf16[9,64,16], index: 12, kind: input, shape index: {}]   ;;  %s8736_s13 = inlined_call_operand.vmem [shape: bf16[9,32,32], index: 13, kind: input, shape index: {}]   ;;  %s8737_s14 = inlined_call_operand.vmem [shape: f32[32,1], index: 14, kind: input, shape index: {}]   ;;  %s8738_s15 = inlined_call_operand.vmem [shape: f32[32,1], index: 15, kind: input, shape index: {}]   ;;  %s8739_s16 = inlined_call_operand.vmem [shape: bf16[9,16,64], index: 16, kind: input, shape index: {}]   ;;  %s8740_s17 = inlined_call_operand.vmem [shape: bf16[9,8,32], index: 17, kind: input, shape index: {}]   ;;  %s8741_s18 = inlined_call_operand.vmem [shape: bf16[16,8], index: 18, kind: input, shape index: {}]   ;;  %s8742_s19 = inlined_call_operand.vmem [shape: bf16[64,256], index: 19, kind: input, shape index: {}]   ;;  %s8743_s20 = inlined_call_operand.vmem [shape: f32[2,16,256], index: 20, kind: output, shape index: {}]  }
   0x1   :  { %8747 = sst [smem:[#allocation2_spill]] %s8723_s0 }
   0x2   :  { %8748 = sst [smem:[#allocation3_spill]] %s8724_s1  ;;  %s7687_s1 = smov 0  }
   0x3   :  { %8749 = sst [smem:[#allocation4_spill]] %s8725_s2 }
   0x4   :  { %8750 = sst [smem:[#allocation5_spill]] %s8726_s3 }
   0x5   :  { %8751 = sst [smem:[#allocation6_spill]] %s8727_s4 }
   0x6   :  { %8752 = sst [smem:[#allocation7_spill]] %s8729_s6 }
   0x7 LB: > { %s5740_s22 = sadd.s32 4294967295, %s7577_s1   ;;  %p5744_p0 = scmp.ge.s32.totalorder %s7577_s1, 1  ;;  %s7577_s1 = sphi %s7687_s1, %s30_s1  }
   0x8   : > { %p580_p1 = scmp.lt.s32.totalorder %s7577_s1, 3 }
   0xa   : > { %p581_p2 = pnand %p5744_p0, %p580_p1 }
   0xb   : > { %s8753_s2 = sld [smem:[#allocation6_spill]] (!%p581_p2)  ;;  %s8754_s26 = sld [smem:[#allocation5_spill]] (!%p581_p2)  ;;  %v7579_v2 = vmov (!%p581_p2), 0   ;;  %v761_v5 = vld [vmem:[%s8730_s7] sm:$0xff] (!%p581_p2)  ;;  %v2989_v7 = vld [vmem:[%s8733_s10 + $0x8] sm:$0xff] (!%p581_p2)  ;;  %v2991_v9 = vld [vmem:[%s8733_s10 + $0x18] sm:$0xff] (!%p581_p2) }
   0xc   : > { %584 = sbr.rel (%p581_p2) target bundleno = 3661 (0xe4d), region = 100  ;;  %7328 = vset.pattern.permute.xlu1 (!%p581_p2), %v7579_v2  ;;  %7327 = vset.pattern.permute.xlu0 (!%p581_p2), %v7579_v2  ;;  %p646_p3 = scmp.lt.s32.totalorder (!%p581_p2), %s5740_s22, 1  ;;  %v2988_v8 = vld [vmem:[%s8733_s10] sm:$0xff] (!%p581_p2)  ;;  %v2990_v10 = vld [vmem:[%s8733_s10 + $0x10] sm:$0xff] (!%p581_p2)  ;;  %v3017_v11 = vld [vmem:[%s8734_s11 + $0x8] sm:$0xff] (!%p581_p2)  ;;  %vm708_vm0 = vcmask (!%p581_p2), 130048  }
   0xd   : > { %744 = vmatprep.mubr.bf16.mxu0 (!%p581_p2), %v7579_v2  ;;  %s8755_s6 = sld [smem:[#allocation7_spill]] (!%p581_p2)  ;;  %v3016_v12 = vld [vmem:[%s8734_s11] sm:$0xff] (!%p581_p2)  ;;  %v3019_v13 = vld [vmem:[%s8734_s11 + $0x18] sm:$0xff] (!%p581_p2)  ;;  %v3018_v14 = vld [vmem:[%s8734_s11 + $0x10] sm:$0xff] (!%p581_p2)  ;;  %s8756_s28 = sld [smem:[#allocation4_spill]] (!%p581_p2)  ;;  %vm1131_vm1 = vcmask (!%p581_p2), 64512  }
   0xe   : > { %v4471_v15 = vld [vmem:[%s8737_s14 + $0x8] sm:$0xff] (!%p581_p2)  ;;  %v4470_v16 = vld [vmem:[%s8737_s14] sm:$0xff] (!%p581_p2)  ;;  %v4473_v17 = vld [vmem:[%s8737_s14 + $0x18] sm:$0xff] (!%p581_p2)  ;;  %s8757_s29 = sld [smem:[#allocation3_spill]] (!%p581_p2)  ;;  %s8758_s0 = sld [smem:[#allocation2_spill]] (!%p581_p2)  ;;  %vm1138_vm2 = vcmask (!%p581_p2), 1043456  }
   0xf   : > { %v4472_v18 = vld [vmem:[%s8737_s14 + $0x10] sm:$0xff] (!%p581_p2)  ;;  %v4499_v19 = vld [vmem:[%s8738_s15 + $0x8] sm:$0xff] (!%p581_p2)  ;;  %v4498_v20 = vld [vmem:[%s8738_s15] sm:$0xff] (!%p581_p2)  ;;  %vm3082_vm3 = vcmask (!%p581_p2), 523264   ;;  %vm3243_vm4 = vcmask (!%p581_p2), 261120   ;;  %vm7581_vm5 = vmmov (!%p581_p2), 0  }
  0x10   : > { %v4501_v21 = vld [vmem:[%s8738_s15 + $0x18] sm:$0xff] (!%p581_p2)  ;;  %v4500_v22 = vld [vmem:[%s8738_s15 + $0x10] sm:$0xff] (!%p581_p2)  ;;  %v7330_v25 = vld [vmem:[%s8731_s8 + $0x40] sm:$0xff] (!%p581_p2)  }
  0x11   : > { %v685_v0 = vld [vmem:[%s8753_s2] sm:$0xff] (!%p581_p2)  ;;  %v686_v3 = vld [vmem:[%s8753_s2 + $0x8] sm:$0xff] (!%p581_p2)  ;;  %6482 = vmatprep.subr.bf16.mxu1 (!%p581_p2), %v7330_v25  ;;  %v7338_v29 = vld [vmem:[%s8731_s8 + $0x50] sm:$0xff] (!%p581_p2)  }
  0x12   : > { %v669_v1 = vld [vmem:[%s8754_s26] sm:$0xff] (!%p581_p2)  ;;  %689 = vperm.xlu1 (!%p581_p2), %7328, %v685_v0   ;;  %v670_v4 = vld [vmem:[%s8754_s26 + $0x8] sm:$0xff] (!%p581_p2)  ;;  %v7340_v30 = vld [vmem:[%s8731_s8 + $0x10] sm:$0xff] (!%p581_p2)  }
  0x13   : > { %673 = vperm.xlu0 %7327, %v669_v1   ;;  %v753_v6 = vld [vmem:[%s8755_s6] sm:$0xff]  ;;  %s8760_s22 = smov (!%p646_p3, %s5740_s22), 1  ;;  %v7334_v27 = vld [vmem:[%s8731_s8 + $0x48] sm:$0xff]   ;;  %v7342_v31 = vld [vmem:[%s8731_s8 + $0x58] sm:$0xff]  }
  0x14   : > { %s5747_s25 = sshll.u32 %s8760_s22, 3  ;;  %v7332_v26 = vld [vmem:[%s8731_s8] sm:$0xff]   ;;  %v7336_v28 = vld [vmem:[%s8731_s8 + $0x8] sm:$0xff]   ;;  %v7344_v32 = vld [vmem:[%s8731_s8 + $0x18] sm:$0xff]  }
  0x15   : > { %s658_s4 = scalar_lea.vmem %s8756_s28, %s5747_s25  ;;  %s654_s30 = scalar_lea.vmem %s8757_s29, %s5747_s25  ;;  %6483 = vmatpush3.bf16.msra.mxu1 %v7332_v26  ;;  %v7346_v33 = vld [vmem:[%s8731_s8 + $0x60] sm:$0xff]   ;;  %v7350_v35 = vld [vmem:[%s8731_s8 + $0x68] sm:$0xff]   ;;  %v7337_v63 = vld [vmem:[%s8731_s8 + $0xd0] sm:$0xff]  }
  0x16   : > { %694 = vperm.xlu1 %7328, %v686_v3   ;;  %v5495_v23 = vld [vmem:[%s658_s4] sm:$0xff]  ;;  %6484 = vmatprep.subr.bf16.mxu1 %v7334_v27  ;;  %s6480_s4 = sshll.u32 %s8760_s22, 5  ;;  %v7333_v61 = vld [vmem:[%s8731_s8 + $0xc8] sm:$0xff]   ;;  %v7339_v0 = vld [vmem:[%s8731_s8 + $0x90] sm:$0xff]  }
  0x17   : > { %678 = vperm.xlu0 %7327, %v670_v4   ;;  %v5488_v24 = vld [vmem:[%s654_s30] sm:$0xff]  ;;  %s7812_s21 = scalar_lea.vmem %s8758_s0, %s6480_s4  ;;  %v7335_v62 = vld [vmem:[%s8731_s8 + $0x88] sm:$0xff]   ;;  %v7341_v1 = vld [vmem:[%s8731_s8 + $0xd8] sm:$0xff]   ;;  %s663_s25 = scalar_lea.vmem %s8743_s20, %s6480_s4 }
  0x18   : > { %v7348_v34 = vld [vmem:[%s8731_s8 + $0x20] sm:$0xff]   ;;  %v666_v37 = vld [vmem:[%s7812_s21 + $0x8] sm:$0xff]  ;;  %v667_v40 = vld [vmem:[%s7812_s21 + $0x10] sm:$0xff] }
  0x19   : > { %6485 = vmatpush3.bf16.msra.mxu1 %v7336_v28  ;;  %v665_v36 = vld [vmem:[%s7812_s21] sm:$0xff]  ;;  %v668_v41 = vld [vmem:[%s7812_s21 + $0x18] sm:$0xff] }
  0x1a   : > { %764 = vperm.xlu1 %7328, %v761_v5   ;;  %6486 = vmatprep.subr.bf16.mxu1 %v7338_v29  ;;  %v7329_v56 = vld [vmem:[%s8731_s8 + $0xc0] sm:$0xff]   ;;  %v7343_v3 = vld [vmem:[%s8731_s8 + $0x98] sm:$0xff]  }
  0x1b   : > { %756 = vperm.xlu0 %7327, %v753_v6   ;;  %v705_v59 = vld [vmem:[%s8728_s5] sm:$0xf]  ;;  %v7349_v6 = vld [vmem:[%s8731_s8 + $0xe8] sm:$0xff]  }
  0x1c   : > { %v7331_v60 = vld [vmem:[%s8731_s8 + $0x80] sm:$0xff]  }
  0x1d   : > { %6487 = vmatpush3.bf16.msra.mxu1 %v7340_v30  ;;  %v7345_v4 = vld [vmem:[%s8731_s8 + $0xe0] sm:$0xff]  }
  0x1e   : > { %2999 = vperm.xlu1 %7328, %v2989_v7   ;;  %6488 = vmatprep.subr.bf16.mxu1 %v7342_v31  ;;  %v7347_v5 = vld [vmem:[%s8731_s8 + $0xa0] sm:$0xff]   ;;  %v7351_v7 = vld [vmem:[%s8731_s8 + $0xa8] sm:$0xff]  }
  0x1f   : > { %2994 = vperm.xlu0 %7327, %v2988_v8   ;;  %v7352_v8 = vld [vmem:[%s8731_s8 + $0x28] sm:$0xff]   ;;  %v7362_v31 = vld [vmem:[%s8731_s8 + $0x100] sm:$0xff]  }
  0x21   : > { %6489 = vmatpush3.bf16.msra.mxu1 %v7344_v32 }
  0x22   : > { %3009 = vperm.xlu1 %7328, %v2991_v9   ;;  %6490 = vmatprep.subr.bf16.mxu1 %v7346_v33  ;;  %v7353_v9 = vld [vmem:[%s8731_s8 + $0xf0] sm:$0xff]   ;;  %v7363_v33 = vld [vmem:[%s8731_s8 + $0x148] sm:$0xff]  }
  0x23   : > { %3004 = vperm.xlu0 %7327, %v2990_v10   ;;  %v7354_v10 = vld [vmem:[%s8731_s8 + $0x70] sm:$0xff]  }
  0x25   : > { %6491 = vmatpush3.bf16.msra.mxu1 %v7348_v34  ;;  %v7364_v34 = vld [vmem:[%s8731_s8 + $0x108] sm:$0xff]  }
  0x26   : > { %3027 = vperm.xlu1 %7328, %v3017_v11   ;;  %6492 = vmatprep.subr.bf16.mxu1 %v7350_v35  ;;  %v7355_v11 = vld [vmem:[%s8731_s8 + $0xb0] sm:$0xff]  }
  0x27   : > { %3022 = vperm.xlu0 %7327, %v3016_v12   ;;  %v7356_v12 = vld [vmem:[%s8731_s8 + $0x30] sm:$0xff]  }
  0x28   : > { %v7365_v35 = vld [vmem:[%s8731_s8 + $0x150] sm:$0xff]  }
  0x29   : > { %6493 = vmatpush3.bf16.msra.mxu1 %v7352_v8  ;;  %v7401_v8 = vld [vmem:[%s8731_s8 + $0x2e0] sm:$0xff]  }
  0x2a   : > { %3037 = vperm.xlu1 %7328, %v3019_v13   ;;  %6494 = vmatprep.subr.bf16.mxu1 %v7354_v10  ;;  %v7357_v13 = vld [vmem:[%s8731_s8 + $0xf8] sm:$0xff]   ;;  %v7403_v10 = vld [vmem:[%s8731_s8 + $0x2e8] sm:$0xff]  }
  0x2b   : > { %3032 = vperm.xlu0 %7327, %v3018_v14   ;;  %v7358_v14 = vld [vmem:[%s8731_s8 + $0x78] sm:$0xff]  }
  0x2d   : > { %6495 = vmatpush3.bf16.msra.mxu1 %v7356_v12  ;;  %v7405_v12 = vld [vmem:[%s8731_s8 + $0x2f0] sm:$0xff]  }
  0x2e   : > { %4481 = vperm.xlu1 %7328, %v4471_v15   ;;  %v7359_v15 = vld [vmem:[%s8731_s8 + $0xb8] sm:$0xff]   ;;  %6496 = vmatprep.subr.bf16.mxu1 %v7358_v14 }
  0x2f   : > { %4476 = vperm.xlu0 %7327, %v4470_v16   ;;  %v7360_v16 = vld [vmem:[%s8731_s8 + $0x38] sm:$0xff]  }
  0x30   : > { %v7407_v14 = vld [vmem:[%s8731_s8 + $0x2f8] sm:$0xff]  }
  0x31   : > { %6497 = vmatpush3.bf16.msra.mxu1 %v7360_v16  ;;  %v7409_v16 = vld [vmem:[%s8731_s8 + $0x3c0] sm:$0xff]  }
  0x32   : > { %4491 = vperm.xlu1 %7328, %v4473_v17   ;;  %v7361_v17 = vld [vmem:[%s8731_s8 + $0x140] sm:$0xff]  }
  0x33   : > { %4486 = vperm.xlu0 %7327, %v4472_v18  }
  0x36   : > { %4509 = vperm.xlu1 %7328, %v4499_v19  }
  0x37   : > { %4504 = vperm.xlu0 %7327, %v4498_v20  }
  0x3a   : > { %4519 = vperm.xlu1 %7328, %v4501_v21  }
  0x3b   : > { %4514 = vperm.xlu0 %7327, %v4500_v22  }
  0x3e   : > { %5498 = vperm.xlu1 %7328, %v5495_v23  }
  0x3f   : > { %5491 = vperm.xlu0 %7327, %v5488_v24  }
  0x91   : > { %v690_v38 = vpop.permute.xlu1 %689 }
  0x92   : > { %v674_v39 = vpop.permute.xlu0 %673 }
  0x93   : > { %v681_v42 = vmul.f32 %v674_v39, %v665_v36  ;;  %v682_v43 = vmul.f32 %v674_v39, %v666_v37  ;;  %v7366_v36 = vld [vmem:[%s8731_s8 + $0x110] sm:$0xff]   ;;  %v7367_v37 = vld [vmem:[%s8731_s8 + $0x158] sm:$0xff]   ;;  %v7369_v39 = vld [vmem:[%s8731_s8 + $0x160] sm:$0xff]  }
  0x95   : > { %v697_v44 = vadd.f32 %v690_v38, %v681_v42  ;;  %v698_v45 = vadd.f32 %v690_v38, %v682_v43  ;;  %v695_v51 = vpop.permute.xlu1 %694  ;;  %v7368_v38 = vld [vmem:[%s8731_s8 + $0x118] sm:$0xff]   ;;  %v7372_v42 = vld [vmem:[%s8731_s8 + $0x128] sm:$0xff]   ;;  %v7373_v43 = vld [vmem:[%s8731_s8 + $0x170] sm:$0xff]  }
  0x96   : > { %v679_v46 = vpop.permute.xlu0 %678 }
  0x97   : > { %v683_v47 = vmul.f32 %v679_v46, %v667_v40  ;;  %v684_v48 = vmul.f32 %v679_v46, %v668_v41  ;;  %v702_v49 = vmax.f32 %v698_v45, 0.0  ;;  %v701_v50 = vmax.f32 %v697_v44, 0.0  ;;  %v7370_v40 = vld [vmem:[%s8731_s8 + $0x120] sm:$0xff]   ;;  %v7371_v41 = vld [vmem:[%s8731_s8 + $0x168] sm:$0xff]   ;;  %v7374_v44 = vld [vmem:[%s8731_s8 + $0x130] sm:$0xff]  }
  0x98   : > { %v7375_v45 = vld [vmem:[%s8731_s8 + $0x178] sm:$0xff]  }
  0x99   : > { %v699_v52 = vadd.f32 %v695_v51, %v683_v47  ;;  %v700_v53 = vadd.f32 %v695_v51, %v684_v48  ;;  %v765_v22 = vpop.permute.xlu1 %764  ;;  %v7376_v46 = vld [vmem:[%s8731_s8 + $0x138] sm:$0xff]   ;;  %v7377_v47 = vld [vmem:[%s8731_s8 + $0x240] sm:$0xff]   ;;  %v7381_v51 = vld [vmem:[%s8731_s8 + $0x250] sm:$0xff]  }
  0x9a   : > { %v757_v18 = vpop.permute.xlu0 %756  ;;  %v7378_v48 = vld [vmem:[%s8731_s8 + $0x200] sm:$0xff]  }
  0x9b   : > { %v704_v54 = vmax.f32 %v700_v53, 0.0  ;;  %v703_v55 = vmax.f32 %v699_v52, 0.0  ;;  %v7382_v52 = vld [vmem:[%s8731_s8 + $0x210] sm:$0xff]   ;;  %v7383_v53 = vld [vmem:[%s8731_s8 + $0x258] sm:$0xff]  }
  0x9d   : > { %v707_v57 = vpack.c.bf16 %v704_v54, %v702_v49  ;;  %v706_v58 = vpack.c.bf16 %v703_v55, %v701_v50  ;;  %v7379_v49 = vld [vmem:[%s8731_s8 + $0x248] sm:$0xff]   ;;  %v7384_v54 = vld [vmem:[%s8731_s8 + $0x218] sm:$0xff]   ;;  %v7385_v55 = vld [vmem:[%s8731_s8 + $0x260] sm:$0xff]  }
  0x9e   : > { %v7380_v50 = vld [vmem:[%s8731_s8 + $0x208] sm:$0xff]  }
  0x9f   : > { %712 = vmatprep.subr.bf16.mxu0 %v707_v57  ;;  %v7387_v57 = vld [vmem:[%s8731_s8 + $0x268] sm:$0xff]  }
  0xa0   : > { %713 = vmatpush1.bf16.msra.mxu0 %v706_v58  ;;  %v7388_v58 = vld [vmem:[%s8731_s8 + $0x228] sm:$0xff]  }
  0xa1   : > { %6504 = vmatprep.subr.bf16.mxu0 %v7329_v56  ;;  %v7386_v56 = vld [vmem:[%s8731_s8 + $0x220] sm:$0xff]  }
  0xa3   : > { %5751 = vmatmul.mubr.msk.bf16.vlgmr.msra.gmra.mrb[0].mxu0 %vm708_vm0, %v705_v59  ;;  %v7389_v59 = vld [vmem:[%s8731_s8 + $0x270] sm:$0xff]  }
  0xa4   : > { %6505 = vmatpush3.bf16.msra.mxu0 %v7331_v60  ;;  %v7390_v60 = vld [vmem:[%s8731_s8 + $0x230] sm:$0xff]  }
  0xa5   : > { %6506 = vmatprep.subr.bf16.mxu0 %v7333_v61  ;;  %v7391_v61 = vld [vmem:[%s8731_s8 + $0x278] sm:$0xff]  }
  0xa8   : > { %6507 = vmatpush3.bf16.msra.mxu0 %v7335_v62  ;;  %v7392_v62 = vld [vmem:[%s8731_s8 + $0x238] sm:$0xff]  }
  0xa9   : > { %6508 = vmatprep.subr.bf16.mxu0 %v7337_v63  ;;  %v7393_v63 = vld [vmem:[%s8731_s8 + $0x2c0] sm:$0xff]  }
  0xac   : > { %6509 = vmatpush3.bf16.msra.mxu0 %v7339_v0  ;;  %v7394_v0 = vld [vmem:[%s8731_s8 + $0x280] sm:$0xff]  }
  0xad   : > { %6510 = vmatprep.subr.bf16.mxu0 %v7341_v1  ;;  %v7395_v1 = vld [vmem:[%s8731_s8 + $0x2c8] sm:$0xff]  }
  0xb0   : > { %6511 = vmatpush3.bf16.msra.mxu0 %v7343_v3  ;;  %v7396_v3 = vld [vmem:[%s8731_s8 + $0x288] sm:$0xff]  }
  0xb1   : > { %6512 = vmatprep.subr.bf16.mxu0 %v7345_v4  ;;  %v7397_v4 = vld [vmem:[%s8731_s8 + $0x2d0] sm:$0xff]  }
  0xb4   : > { %6513 = vmatpush3.bf16.msra.mxu0 %v7347_v5  ;;  %v7398_v5 = vld [vmem:[%s8731_s8 + $0x290] sm:$0xff]  }
  0xb5   : > { %6514 = vmatprep.subr.bf16.mxu0 %v7349_v6  ;;  %v7399_v6 = vld [vmem:[%s8731_s8 + $0x2d8] sm:$0xff]  }
  0xb8   : > { %6515 = vmatpush3.bf16.msra.mxu0 %v7351_v7  ;;  %v7400_v7 = vld [vmem:[%s8731_s8 + $0x298] sm:$0xff]  }
  0xb9   : > { %6516 = vmatprep.subr.bf16.mxu0 %v7353_v9  ;;  %v7402_v9 = vld [vmem:[%s8731_s8 + $0x2a0] sm:$0xff]  }
  0xbc   : > { %6517 = vmatpush3.bf16.msra.mxu0 %v7355_v11  ;;  %v7404_v11 = vld [vmem:[%s8731_s8 + $0x2a8] sm:$0xff]  }
  0xbd   : > { %6518 = vmatprep.subr.bf16.mxu0 %v7357_v13  ;;  %v7406_v13 = vld [vmem:[%s8731_s8 + $0x2b0] sm:$0xff]  }
  0xc0   : > { %6519 = vmatpush3.bf16.msra.mxu0 %v7359_v15  ;;  %v7408_v15 = vld [vmem:[%s8731_s8 + $0x2b8] sm:$0xff]  }
  0xc1   : > { %6532 = vmatprep.subr.bf16.mxu0 %v7361_v17  ;;  %v7425_v17 = vld [vmem:[%s8732_s9 + $0x10] sm:$0xff]  }
 0x176   : > { %v746_v19 = vpop.f32.mrb[0].mxu0 }
 0x177   : > { %v759_v20 = vmul.f32 %v757_v18, %v746_v19  ;;  %v748_v21 = vpop.f32.mrb[1].mxu0  ;;  %v7411_v19 = vld [vmem:[%s8731_s8 + $0x3c8] sm:$0xff]  }
 0x178   : > { %v760_v23 = vmul.f32 %v757_v18, %v748_v21  ;;  %v750_v24 = vpop.f32.mrb[2].mxu0  ;;  %v7410_v18 = vld [vmem:[%s8731_s8 + $0x380] sm:$0xff]   ;;  %v7413_v21 = vld [vmem:[%s8731_s8 + $0x3d0] sm:$0xff]  }
 0x179   : > { %v767_v25 = vadd.f32 %v765_v22, %v759_v20  ;;  %v751_v26 = vpop.f32.mrb[3].mxu0  ;;  %v7412_v20 = vld [vmem:[%s8731_s8 + $0x388] sm:$0xff]   ;;  %v7416_v24 = vld [vmem:[%s8731_s8 + $0x398] sm:$0xff]  }
 0x17a   : > { %v768_v27 = vadd.f32 %v765_v22, %v760_v23  ;;  %v7414_v22 = vld [vmem:[%s8731_s8 + $0x390] sm:$0xff]   ;;  %v7415_v23 = vld [vmem:[%s8731_s8 + $0x3d8] sm:$0xff]   ;;  %v7418_v26 = vld [vmem:[%s8731_s8 + $0x3a0] sm:$0xff]  }
 0x17b   : > { %v769_v28 = vmax.f32 %v767_v25, 0.0  ;;  %v7417_v25 = vld [vmem:[%s8731_s8 + $0x3e0] sm:$0xff]  }
 0x17c   : > { %v770_v29 = vmax.f32 %v768_v27, 0.0  ;;  %v7419_v27 = vld [vmem:[%s8731_s8 + $0x3e8] sm:$0xff]  }
 0x17d   : > { %v7893_v32 = vpack.c.bf16 %v769_v28, %v769_v28  ;;  %v7420_v28 = vld [vmem:[%s8731_s8 + $0x3a8] sm:$0xff]  }
 0x17e   : > { %v7888_v30 = vpack.c.bf16 %v770_v29, %v770_v29  ;;  %v7421_v29 = vld [vmem:[%s8731_s8 + $0x3f0] sm:$0xff]  }
 0x180   : > { %933 = vmatprep.mubr.bf16.mxu1 %v7888_v30  ;;  %1107 = vmatprep.mubr.bf16.mxu0 %v7888_v30 }
 0x181   : > { %934 = vmatmul.mubr.bf16.vlgmr.msra.gmra.mrb[0].mxu1 %v7893_v32  ;;  %1108 = vmatmul.mubr.bf16.vlgmr.msra.gmra.mrb[4].mxu0 %v7893_v32 }
 0x182   : > { %6533 = vmatpush3.bf16.msra.mxu0 %v7362_v31  ;;  %1420 = vmatprep.mubr.bf16.mxu0 %v7888_v30  ;;  %v7422_v31 = vld [vmem:[%s8731_s8 + $0x3b0] sm:$0xff]  }
 0x183   : > { %6534 = vmatprep.subr.bf16.mxu0 %v7363_v33  ;;  %6853 = vmatprep.mubr.msk.bf16.mxu1 %vm1131_vm1, %v7425_v17  ;;  %v7423_v33 = vld [vmem:[%s8731_s8 + $0x3f8] sm:$0xff]  }
 0x186   : > { %6535 = vmatpush3.bf16.msra.mxu0 %v7364_v34  ;;  %v7424_v34 = vld [vmem:[%s8731_s8 + $0x3b8] sm:$0xff]  }
 0x187   : > { %6536 = vmatprep.subr.bf16.mxu0 %v7365_v35 }
 0x18a   : > { %6537 = vmatpush3.bf16.msra.mxu0 %v7366_v36 }
 0x18b   : > { %6538 = vmatprep.subr.bf16.mxu0 %v7367_v37 }
 0x18e   : > { %6539 = vmatpush3.bf16.msra.mxu0 %v7368_v38 }
 0x18f   : > { %6540 = vmatprep.subr.bf16.mxu0 %v7369_v39 }
 0x192   : > { %6541 = vmatpush3.bf16.msra.mxu0 %v7370_v40 }
 0x193   : > { %6542 = vmatprep.subr.bf16.mxu0 %v7371_v41 }
 0x196   : > { %6543 = vmatpush3.bf16.msra.mxu0 %v7372_v42 }
 0x197   : > { %6544 = vmatprep.subr.bf16.mxu0 %v7373_v43 }
 0x19a   : > { %6545 = vmatpush3.bf16.msra.mxu0 %v7374_v44 }
 0x19b   : > { %6546 = vmatprep.subr.bf16.mxu0 %v7375_v45 }
 0x19e   : > { %6547 = vmatpush3.bf16.msra.mxu0 %v7376_v46 }
 0x19f   : > { %6582 = vmatprep.subr.bf16.mxu0 %v7377_v47 }
 0x1a1   : > { %1421 = vmatmul.mubr.bf16.vlgmr.msra.gmra.mrb[8].mxu0 %v7893_v32 }
 0x1a2   : > { %6583 = vmatpush3.bf16.msra.mxu0 %v7378_v48  ;;  %1914 = vmatprep.mubr.bf16.mxu0 %v7888_v30  ;;  %v7426_v48 = vld [vmem:[%s8732_s9 + $0x18] sm:$0xff]  }
 0x1a3   : > { %6584 = vmatprep.subr.bf16.mxu0 %v7379_v49  ;;  %v7427_v49 = vld [vmem:[%s8732_s9] sm:$0xff]  }
 0x1a6   : > { %6585 = vmatpush3.bf16.msra.mxu0 %v7380_v50 }
 0x1a7   : > { %6586 = vmatprep.subr.bf16.mxu0 %v7381_v51  ;;  %v7428_v51 = vld [vmem:[%s8732_s9 + $0x8] sm:$0xff]  }
 0x1aa   : > { %6587 = vmatpush3.bf16.msra.mxu0 %v7382_v52  ;;  %v7429_v52 = vld [vmem:[%s8732_s9 + $0x20] sm:$0xff]  }
 0x1ab   : > { %6588 = vmatprep.subr.bf16.mxu0 %v7383_v53 }
 0x1ae   : > { %6589 = vmatpush3.bf16.msra.mxu0 %v7384_v54 }
 0x1af   : > { %6590 = vmatprep.subr.bf16.mxu0 %v7385_v55 }
 0x1b2   : > { %6591 = vmatpush3.bf16.msra.mxu0 %v7386_v56 }
 0x1b3   : > { %6592 = vmatprep.subr.bf16.mxu0 %v7387_v57 }
 0x1b6   : > { %6593 = vmatpush3.bf16.msra.mxu0 %v7388_v58 }
 0x1b7   : > { %6594 = vmatprep.subr.bf16.mxu0 %v7389_v59  ;;  %v7431_v59 = vld [vmem:[%s8731_s8 + $0x1c0] sm:$0xff]  }
 0x1ba   : > { %6595 = vmatpush3.bf16.msra.mxu0 %v7390_v60 }
 0x1bb   : > { %6596 = vmatprep.subr.bf16.mxu0 %v7391_v61  ;;  %v7430_v61 = vld [vmem:[%s8732_s9 + $0x28] sm:$0xff]  }
 0x1be   : > { %6597 = vmatpush3.bf16.msra.mxu0 %v7392_v62  ;;  %v7432_v62 = vld [vmem:[%s8731_s8 + $0x180] sm:$0xff]  }
 0x1bf   : > { %6607 = vmatprep.subr.bf16.mxu0 %v7393_v63  ;;  %v7433_v63 = vld [vmem:[%s8731_s8 + $0x1c8] sm:$0xff]  }
 0x1c1   : > { %1915 = vmatmul.mubr.bf16.vlgmr.msra.gmra.mrb[12].mxu0 %v7893_v32 }
 0x1c2   : > { %6608 = vmatpush3.bf16.msra.mxu0 %v7394_v0  ;;  %2161 = vmatprep.mubr.bf16.mxu0 %v7888_v30  ;;  %v7434_v0 = vld [vmem:[%s8731_s8 + $0x188] sm:$0xff]  }
 0x1c3   : > { %6609 = vmatprep.subr.bf16.mxu0 %v7395_v1  ;;  %v7435_v1 = vld [vmem:[%s8731_s8 + $0x1d0] sm:$0xff]  }
 0x1c6   : > { %6610 = vmatpush3.bf16.msra.mxu0 %v7396_v3  ;;  %v7436_v3 = vld [vmem:[%s8731_s8 + $0x190] sm:$0xff]  }
 0x1c7   : > { %6611 = vmatprep.subr.bf16.mxu0 %v7397_v4  ;;  %v7437_v4 = vld [vmem:[%s8731_s8 + $0x1d8] sm:$0xff]  }
 0x1ca   : > { %6612 = vmatpush3.bf16.msra.mxu0 %v7398_v5  ;;  %v7438_v5 = vld [vmem:[%s8731_s8 + $0x198] sm:$0xff]  }
 0x1cb   : > { %6613 = vmatprep.subr.bf16.mxu0 %v7399_v6  ;;  %v7439_v6 = vld [vmem:[%s8731_s8 + $0x1e0] sm:$0xff]  }
 0x1ce   : > { %6614 = vmatpush3.bf16.msra.mxu0 %v7400_v7  ;;  %v7440_v7 = vld [vmem:[%s8731_s8 + $0x1a0] sm:$0xff]  }
 0x1cf   : > { %6615 = vmatprep.subr.bf16.mxu0 %v7401_v8  ;;  %v7441_v8 = vld [vmem:[%s8731_s8 + $0x1e8] sm:$0xff]  }
 0x1d2   : > { %6616 = vmatpush3.bf16.msra.mxu0 %v7402_v9  ;;  %v7442_v9 = vld [vmem:[%s8731_s8 + $0x1a8] sm:$0xff]  }
 0x1d3   : > { %6617 = vmatprep.subr.bf16.mxu0 %v7403_v10  ;;  %v7443_v10 = vld [vmem:[%s8731_s8 + $0x1f0] sm:$0xff]  }
 0x1d6   : > { %6618 = vmatpush3.bf16.msra.mxu0 %v7404_v11  ;;  %v7444_v11 = vld [vmem:[%s8731_s8 + $0x1b0] sm:$0xff]  }
 0x1d7   : > { %6619 = vmatprep.subr.bf16.mxu0 %v7405_v12 }
 0x1da   : > { %6620 = vmatpush3.bf16.msra.mxu0 %v7406_v13  ;;  %v7445_v13 = vld [vmem:[%s8731_s8 + $0x1f8] sm:$0xff]  }
 0x1db   : > { %6621 = vmatprep.subr.bf16.mxu0 %v7407_v14 }
 0x1de   : > { %6622 = vmatpush3.bf16.msra.mxu0 %v7408_v15 }
 0x1df   : > { %6657 = vmatprep.subr.bf16.mxu0 %v7409_v16 }
 0x1e1   : > { %2162 = vmatmul.mubr.bf16.vlgmr.msra.gmra.mrb[16].mxu0 %v7893_v32 }
 0x1e2   : > { %6658 = vmatpush3.bf16.msra.mxu0 %v7410_v18  ;;  %2655 = vmatprep.mubr.bf16.mxu0 %v7888_v30  ;;  %v7446_v18 = vld [vmem:[%s8731_s8 + $0x1b8] sm:$0xff]  }
 0x1e3   : > { %6659 = vmatprep.subr.bf16.mxu0 %v7411_v19 }
 0x1e6   : > { %6660 = vmatpush3.bf16.msra.mxu0 %v7412_v20 }
 0x1e7   : > { %6661 = vmatprep.subr.bf16.mxu0 %v7413_v21 }
 0x1ea   : > { %6662 = vmatpush3.bf16.msra.mxu0 %v7414_v22 }
 0x1eb   : > { %6663 = vmatprep.subr.bf16.mxu0 %v7415_v23 }
 0x1ee   : > { %6664 = vmatpush3.bf16.msra.mxu0 %v7416_v24 }
 0x1ef   : > { %6665 = vmatprep.subr.bf16.mxu0 %v7417_v25 }
 0x1f2   : > { %6666 = vmatpush3.bf16.msra.mxu0 %v7418_v26 }
 0x1f3   : > { %6667 = vmatprep.subr.bf16.mxu0 %v7419_v27 }
 0x1f6   : > { %6668 = vmatpush3.bf16.msra.mxu0 %v7420_v28 }
 0x1f7   : > { %6669 = vmatprep.subr.bf16.mxu0 %v7421_v29  ;;  %v7447_v29 = vld [vmem:[%s8732_s9 + $0x30] sm:$0xff]  }
 0x1fa   : > { %6670 = vmatpush3.bf16.msra.mxu0 %v7422_v31 }
 0x1fb   : > { %6671 = vmatprep.subr.bf16.mxu0 %v7423_v33 }
 0x1fe   : > { %6672 = vmatpush3.bf16.msra.mxu0 %v7424_v34 }
 0x201   : > { %2656 = vmatmul.mubr.bf16.vlgmr.msra.gmra.mrb[20].mxu0 %v7893_v32 }
 0x254   : > { %v6498_v35 = vpop.f32.mrb[0].mxu1  ;;  %v6520_v36 = vpop.f32.mrb[4].mxu0 }
 0x255   : > { %v6499_v37 = vpop.f32.mrb[1].mxu1  ;;  %v6521_v38 = vpop.f32.mrb[5].mxu0 }
 0x256   : > { %v6500_v39 = vadd.f32 %v6499_v37, %v6498_v35  ;;  %v6522_v40 = vadd.f32 %v6521_v38, %v6520_v36  ;;  %v6501_v41 = vpop.f32.mrb[2].mxu1  ;;  %v6523_v42 = vpop.f32.mrb[6].mxu0 }
 0x257   : > { %v6502_v43 = vpop.f32.mrb[3].mxu1  ;;  %v6524_v44 = vpop.f32.mrb[7].mxu0  ;;  %v7449_v41 = vld [vmem:[%s8732_s9 + $0x40] sm:$0xff]  }
 0x258   : > { %v1120_v45 = vpack.c.bf16 %v6522_v40, %v6522_v40  ;;  %v945_v46 = vpack.c.bf16 %v6500_v39, %v6500_v39  ;;  %v7448_v40 = vld [vmem:[%s8732_s9 + $0x38] sm:$0xff]   ;;  %v7450_v44 = vld [vmem:[%s8732_s9 + $0x48] sm:$0xff]  }
 0x25a   : > { %v1140_v47 = vsel %vm1138_vm2, %v1120_v45, 0  ;;  %7307 = vmatprep.subr.msk.bf16.mxu1 %vm1138_vm2, %v1120_v45  ;;  %v1208_v50 = vsel %vm1138_vm2, %v945_v46, 0  ;;  %v7451_v45 = vld [vmem:[%s8732_s9 + $0x50] sm:$0xff]  }
 0x25b   : > { %6852 = vmatpush3.bf16.msra.mxu1 %v1140_v47 }
 0x25c   : > { %7308 = vmatprep.subr.msk.bf16.mxu1 %vm1138_vm2, %v945_v46  ;;  %v7452_v46 = vld [vmem:[%s8731_s8 + $0x340] sm:$0xff]  }
 0x25e   : > { %6854 = vmatmul.mubr.msk.bf16.vlgmr.msra.gmra.mrb[4].mxu1 %vm1131_vm1, %v7426_v48  ;;  %v7453_v48 = vld [vmem:[%s8732_s9 + $0x58] sm:$0xff]  }
 0x25f   : > { %6858 = vmatpush3.bf16.msra.mxu1 %v1208_v50  ;;  %6859 = vmatprep.mubr.msk.bf16.mxu1 %vm1131_vm1, %v7427_v49  ;;  %v7454_v49 = vld [vmem:[%s8731_s8 + $0x300] sm:$0xff]   ;;  %v7455_v50 = vld [vmem:[%s8731_s8 + $0x348] sm:$0xff]  }
 0x26a   : > { %6860 = vmatmul.mubr.msk.bf16.vlgmr.msra.gmra.mrb[4].mxu1 %vm1131_vm1, %v7428_v51  ;;  %v7456_v51 = vld [vmem:[%s8731_s8 + $0x308] sm:$0xff]  }
 0x26b   : > { %6865 = vmatprep.mubr.msk.bf16.mxu1 %vm1131_vm1, %v7429_v52  ;;  %v7457_v52 = vld [vmem:[%s8731_s8 + $0x350] sm:$0xff]  }
 0x274   : > { %v6548_v53 = vpop.f32.mrb[8].mxu0 }
 0x275   : > { %v6549_v54 = vpop.f32.mrb[9].mxu0 }
 0x276   : > { %v6550_v55 = vadd.f32 %v6549_v54, %v6548_v53  ;;  %v6551_v56 = vpop.f32.mrb[10].mxu0  ;;  %v7458_v53 = vld [vmem:[%s8731_s8 + $0x310] sm:$0xff]   ;;  %v7459_v54 = vld [vmem:[%s8731_s8 + $0x358] sm:$0xff]  }
 0x277   : > { %v6552_v57 = vpop.f32.mrb[11].mxu0  ;;  %v7461_v56 = vld [vmem:[%s8731_s8 + $0x360] sm:$0xff]  }
 0x278   : > { %v1433_v58 = vpack.c.bf16 %v6550_v55, %v6550_v55  ;;  %v7460_v55 = vld [vmem:[%s8731_s8 + $0x318] sm:$0xff]   ;;  %v7462_v57 = vld [vmem:[%s8731_s8 + $0x320] sm:$0xff]  }
 0x27a   : > { %v1451_v60 = vsel %vm1138_vm2, %v1433_v58, 0  ;;  %7309 = vmatprep.subr.msk.bf16.mxu1 %vm1138_vm2, %v1433_v58  ;;  %v7463_v58 = vld [vmem:[%s8731_s8 + $0x368] sm:$0xff]  }
 0x27b   : > { %6864 = vmatpush3.bf16.msra.mxu1 %v1451_v60  ;;  %v7465_v60 = vld [vmem:[%s8731_s8 + $0x370] sm:$0xff]  }
 0x27c   : > { %6557 = vmatprep.subr.bf16.mxu1 %v7431_v59  ;;  %v7464_v59 = vld [vmem:[%s8731_s8 + $0x328] sm:$0xff]  }
 0x27e   : > { %6866 = vmatmul.mubr.msk.bf16.vlgmr.msra.gmra.mrb[4].mxu1 %vm1131_vm1, %v7430_v61  ;;  %v7466_v61 = vld [vmem:[%s8731_s8 + $0x330] sm:$0xff]  }
 0x27f   : > { %6558 = vmatpush3.bf16.msra.mxu1 %v7432_v62  ;;  %1667 = vmatprep.mubr.bf16.mxu1 %v7888_v30  ;;  %v7467_v62 = vld [vmem:[%s8731_s8 + $0x378] sm:$0xff]  }
 0x280   : > { %6559 = vmatprep.subr.bf16.mxu1 %v7433_v63  ;;  %v7468_v63 = vld [vmem:[%s8731_s8 + $0x338] sm:$0xff]  }
 0x283   : > { %6560 = vmatpush3.bf16.msra.mxu1 %v7434_v0  ;;  %v7469_v0 = vld [vmem:[%s8732_s9 + $0x60] sm:$0xff]  }
 0x284   : > { %6561 = vmatprep.subr.bf16.mxu1 %v7435_v1 }
 0x287   : > { %6562 = vmatpush3.bf16.msra.mxu1 %v7436_v3 }
 0x288   : > { %6563 = vmatprep.subr.bf16.mxu1 %v7437_v4 }
 0x28b   : > { %6564 = vmatpush3.bf16.msra.mxu1 %v7438_v5 }
 0x28c   : > { %6565 = vmatprep.subr.bf16.mxu1 %v7439_v6 }
 0x28f   : > { %6566 = vmatpush3.bf16.msra.mxu1 %v7440_v7 }
 0x290   : > { %6567 = vmatprep.subr.bf16.mxu1 %v7441_v8 }
 0x293   : > { %6568 = vmatpush3.bf16.msra.mxu1 %v7442_v9 }
 0x294   : > { %v6598_v12 = vpop.f32.mrb[12].mxu0  ;;  %6569 = vmatprep.subr.bf16.mxu1 %v7443_v10  ;;  %v7470_v10 = vld [vmem:[%s8732_s9 + $0x68] sm:$0xff]  }
 0x295   : > { %v6599_v14 = vpop.f32.mrb[13].mxu0 }
 0x296   : > { %v6600_v15 = vadd.f32 %v6599_v14, %v6598_v12  ;;  %v6601_v16 = vpop.f32.mrb[14].mxu0  ;;  %v7472_v12 = vld [vmem:[%s8731_s8 + $0x440] sm:$0xff]   ;;  %v7473_v14 = vld [vmem:[%s8732_s9 + $0x78] sm:$0xff]  }
 0x297   : > { %6570 = vmatpush3.bf16.msra.mxu1 %v7444_v11  ;;  %v6602_v17 = vpop.f32.mrb[15].mxu0  ;;  %v7471_v11 = vld [vmem:[%s8732_s9 + $0x70] sm:$0xff]   ;;  %v7475_v16 = vld [vmem:[%s8731_s8 + $0x448] sm:$0xff]  }
 0x298   : > { %6571 = vmatprep.subr.bf16.mxu1 %v7445_v13  ;;  %v1927_v38 = vpack.c.bf16 %v6600_v15, %v6600_v15  ;;  %v7474_v15 = vld [vmem:[%s8731_s8 + $0x400] sm:$0xff]   ;;  %v7476_v17 = vld [vmem:[%s8731_s8 + $0x408] sm:$0xff]  }
 0x29a   : > { %v1945_v42 = vsel %vm1138_vm2, %v1927_v38, 0 }
 0x29b   : > { %6572 = vmatpush3.bf16.msra.mxu1 %v7446_v18  ;;  %v7477_v18 = vld [vmem:[%s8731_s8 + $0x450] sm:$0xff]  }
 0x29e   : > { %1668 = vmatmul.mubr.bf16.vlgmr.msra.gmra.mrb[8].mxu1 %v7893_v32 }
 0x29f   : > { %6871 = vmatprep.mubr.msk.bf16.mxu1 %vm1131_vm1, %v7447_v29  ;;  %v7489_v29 = vld [vmem:[%s8732_s9 + $0x80] sm:$0xff]  }
 0x2b4   : > { %v6623_v19 = vpop.f32.mrb[16].mxu0 }
 0x2b5   : > { %v6624_v20 = vpop.f32.mrb[17].mxu0 }
 0x2b6   : > { %v6625_v21 = vadd.f32 %v6624_v20, %v6623_v19  ;;  %v6626_v22 = vpop.f32.mrb[18].mxu0  ;;  %v7478_v19 = vld [vmem:[%s8731_s8 + $0x410] sm:$0xff]   ;;  %v7479_v20 = vld [vmem:[%s8731_s8 + $0x458] sm:$0xff]  }
 0x2b7   : > { %v6627_v23 = vpop.f32.mrb[19].mxu0  ;;  %v7482_v22 = vld [vmem:[%s8731_s8 + $0x420] sm:$0xff]  }
 0x2b8   : > { %v2174_v43 = vpack.c.bf16 %v6625_v21, %v6625_v21  ;;  %v7481_v21 = vld [vmem:[%s8731_s8 + $0x460] sm:$0xff]   ;;  %v7483_v23 = vld [vmem:[%s8731_s8 + $0x468] sm:$0xff]  }
 0x2ba   : > { %v2192_v47 = vsel %vm1138_vm2, %v2174_v43, 0 }
 0x2d4   : > { %v6673_v24 = vpop.f32.mrb[20].mxu0 }
 0x2d5   : > { %v6674_v25 = vpop.f32.mrb[21].mxu0 }
 0x2d6   : > { %v8173_v26 = vadd.f32 %v6674_v25, %v6673_v24  ;;  %v6676_v27 = vpop.f32.mrb[22].mxu0  ;;  %v7484_v24 = vld [vmem:[%s8731_s8 + $0x428] sm:$0xff]   ;;  %v7485_v25 = vld [vmem:[%s8731_s8 + $0x470] sm:$0xff]  }
 0x2d7   : > { %v6677_v28 = vpop.f32.mrb[23].mxu0  ;;  %v7487_v27 = vld [vmem:[%s8731_s8 + $0x478] sm:$0xff]  }
 0x2d8   : > { %v2668_v8 = vpack.c.bf16 %v8173_v26, %v8173_v26  ;;  %v7486_v26 = vld [vmem:[%s8731_s8 + $0x430] sm:$0xff]   ;;  %v7488_v28 = vld [vmem:[%s8731_s8 + $0x438] sm:$0xff]  }
 0x2da   : > { %v2686_v13 = vsel %vm1138_vm2, %v2668_v8, 0 }
 0x371   : > { %v6573_v31 = vpop.f32.mrb[8].mxu1 }
 0x372   : > { %v6574_v33 = vpop.f32.mrb[9].mxu1 }
 0x373   : > { %v6575_v34 = vadd.f32 %v6574_v33, %v6573_v31  ;;  %v6576_v35 = vpop.f32.mrb[10].mxu1  ;;  %v7491_v31 = vld [vmem:[%s8735_s12] sm:$0xff]  }
 0x374   : > { %v6577_v36 = vpop.f32.mrb[11].mxu1  ;;  %6905 = vmatprep.subr.bf16.mxu0 %v7491_v31 }
 0x375   : > { %v1680_v37 = vpack.c.bf16 %v6575_v34, %v6575_v34  ;;  %6906 = vmatpush3.bf16.msra.mxu0 %v7491_v31 }
 0x377   : > { %v1698_v39 = vsel %vm1138_vm2, %v1680_v37, 0  ;;  %7310 = vmatprep.subr.msk.bf16.mxu1 %vm1138_vm2, %v1680_v37 }
 0x378   : > { %6870 = vmatpush3.bf16.msra.mxu1 %v1698_v39 }
 0x379   : > { %7311 = vmatprep.subr.msk.bf16.mxu1 %vm1138_vm2, %v1927_v38 }
 0x37b   : > { %6872 = vmatmul.mubr.msk.bf16.vlgmr.msra.gmra.mrb[4].mxu1 %vm1131_vm1, %v7448_v40  ;;  %v7490_v40 = vld [vmem:[%s8732_s9 + $0x88] sm:$0xff]  }
 0x37c   : > { %6876 = vmatpush3.bf16.msra.mxu1 %v1945_v42  ;;  %6877 = vmatprep.mubr.msk.bf16.mxu1 %vm1131_vm1, %v7449_v41  ;;  %v7493_v41 = vld [vmem:[%s8735_s12 + $0x8] sm:$0xff]  }
 0x37d   : > { %7312 = vmatprep.subr.msk.bf16.mxu1 %vm1138_vm2, %v2174_v43  ;;  %v7494_v42 = vld [vmem:[%s8735_s12 + $0x48] sm:$0xff]   ;;  %6907 = vmatprep.subr.bf16.mxu0 %v7493_v41  ;;  %v7495_v43 = vld [vmem:[%s8735_s12 + $0x10] sm:$0xff]  }
 0x37e   : > { %6908 = vmatpush3.bf16.msra.mxu0 %v7493_v41 }
 0x37f   : > { %6909 = vmatprep.subr.bf16.mxu0 %v7495_v43 }
 0x382   : > { %6910 = vmatpush3.bf16.msra.mxu0 %v7495_v43 }
 0x387   : > { %6878 = vmatmul.mubr.msk.bf16.vlgmr.msra.gmra.mrb[4].mxu1 %vm1131_vm1, %v7450_v44  ;;  %v7496_v44 = vld [vmem:[%s8735_s12 + $0x50] sm:$0xff]  }
 0x388   : > { %6882 = vmatpush3.bf16.msra.mxu1 %v2192_v47  ;;  %6883 = vmatprep.mubr.msk.bf16.mxu1 %vm1131_vm1, %v7451_v45  ;;  %v7497_v45 = vld [vmem:[%s8735_s12 + $0x18] sm:$0xff]   ;;  %v7499_v47 = vld [vmem:[%s8735_s12 + $0x20] sm:$0xff]  }
 0x389   : > { %6632 = vmatprep.subr.bf16.mxu1 %v7452_v46  ;;  %v7498_v46 = vld [vmem:[%s8735_s12 + $0x58] sm:$0xff]   ;;  %6911 = vmatprep.subr.bf16.mxu0 %v7497_v45 }
 0x38a   : > { %6912 = vmatpush3.bf16.msra.mxu0 %v7497_v45 }
 0x38b   : > { %6917 = vmatprep.subr.bf16.mxu0 %v7499_v47 }
 0x393   : > { %6884 = vmatmul.mubr.msk.bf16.vlgmr.msra.gmra.mrb[4].mxu1 %vm1131_vm1, %v7453_v48  ;;  %v7500_v48 = vld [vmem:[%s8735_s12 + $0x60] sm:$0xff]  }
 0x394   : > { %6633 = vmatpush3.bf16.msra.mxu1 %v7454_v49  ;;  %2408 = vmatprep.mubr.bf16.mxu1 %v7888_v30  ;;  %v2995_v49 = vpop.permute.xlu0 %2994 }
 0x395   : > { %6634 = vmatprep.subr.bf16.mxu1 %v7455_v50  ;;  %v3000_v50 = vpop.permute.xlu1 %2999 }
 0x398   : > { %6635 = vmatpush3.bf16.msra.mxu1 %v7456_v51  ;;  %v3005_v51 = vpop.permute.xlu0 %3004 }
 0x399   : > { %6636 = vmatprep.subr.bf16.mxu1 %v7457_v52  ;;  %v3010_v52 = vpop.permute.xlu1 %3009 }
 0x39c   : > { %6637 = vmatpush3.bf16.msra.mxu1 %v7458_v53  ;;  %v3023_v53 = vpop.permute.xlu0 %3022 }
 0x39d   : > { %6638 = vmatprep.subr.bf16.mxu1 %v7459_v54  ;;  %v3028_v54 = vpop.permute.xlu1 %3027 }
 0x3a0   : > { %6639 = vmatpush3.bf16.msra.mxu1 %v7460_v55 }
 0x3a1   : > { %6640 = vmatprep.subr.bf16.mxu1 %v7461_v56 }
 0x3a4   : > { %6641 = vmatpush3.bf16.msra.mxu1 %v7462_v57 }
 0x3a5   : > { %6642 = vmatprep.subr.bf16.mxu1 %v7463_v58  ;;  %v3033_v58 = vpop.permute.xlu0 %3032 }
 0x3a8   : > { %6643 = vmatpush3.bf16.msra.mxu1 %v7464_v59 }
 0x3a9   : > { %6644 = vmatprep.subr.bf16.mxu1 %v7465_v60 }
 0x3ac   : > { %6645 = vmatpush3.bf16.msra.mxu1 %v7466_v61 }
 0x3ad   : > { %6646 = vmatprep.subr.bf16.mxu1 %v7467_v62 }
 0x3b0   : > { %6647 = vmatpush3.bf16.msra.mxu1 %v7468_v63 }
 0x3b3   : > { %2409 = vmatmul.mubr.bf16.vlgmr.msra.gmra.mrb[12].mxu1 %v7893_v32 }
 0x3b4   : > { %6889 = vmatprep.mubr.msk.bf16.mxu1 %vm1131_vm1, %v7469_v0  ;;  %v3038_v0 = vpop.permute.xlu1 %3037 }
 0x486   : > { %v6648_v1 = vpop.f32.mrb[12].mxu1 }
 0x487   : > { %v6649_v3 = vpop.f32.mrb[13].mxu1 }
 0x488   : > { %v6650_v4 = vadd.f32 %v6649_v3, %v6648_v1  ;;  %v6651_v5 = vpop.f32.mrb[14].mxu1 }
 0x489   : > { %v6652_v6 = vpop.f32.mrb[15].mxu1 }
 0x48a   : > { %v2421_v7 = vpack.c.bf16 %v6650_v4, %v6650_v4 }
 0x48c   : > { %v2439_v9 = vsel %vm1138_vm2, %v2421_v7, 0  ;;  %7313 = vmatprep.subr.msk.bf16.mxu1 %vm1138_vm2, %v2421_v7 }
 0x48d   : > { %6888 = vmatpush3.bf16.msra.mxu1 %v2439_v9 }
 0x48e   : > { %7314 = vmatprep.subr.msk.bf16.mxu1 %vm1138_vm2, %v2668_v8 }
 0x490   : > { %6890 = vmatmul.mubr.msk.bf16.vlgmr.msra.gmra.mrb[4].mxu1 %vm1131_vm1, %v7470_v10 }
 0x491   : > { %6894 = vmatpush3.bf16.msra.mxu1 %v2686_v13  ;;  %6895 = vmatprep.mubr.msk.bf16.mxu1 %vm1131_vm1, %v7471_v11  ;;  %v7502_v13 = vld [vmem:[%s8735_s12 + $0x68] sm:$0xff]  }
 0x492   : > { %6682 = vmatprep.subr.bf16.mxu1 %v7472_v12  ;;  %v7501_v12 = vld [vmem:[%s8735_s12 + $0x28] sm:$0xff]  }
 0x49c   : > { %6896 = vmatmul.mubr.msk.bf16.vlgmr.msra.gmra.mrb[4].mxu1 %vm1131_vm1, %v7473_v14  ;;  %v7503_v14 = vld [vmem:[%s8735_s12 + $0x30] sm:$0xff]  }
 0x49d   : > { %6683 = vmatpush3.bf16.msra.mxu1 %v7474_v15  ;;  %2902 = vmatprep.mubr.bf16.mxu1 %v7888_v30  ;;  %v7480_v30 = vld [vmem:[%s8731_s8 + $0x418] sm:$0xff]   ;;  %v7504_v15 = vld [vmem:[%s8735_s12 + $0x70] sm:$0xff]  }
 0x49e   : > { %6684 = vmatprep.subr.bf16.mxu1 %v7475_v16  ;;  %v7505_v16 = vld [vmem:[%s8735_s12 + $0x38] sm:$0xff]  }
 0x4a1   : > { %6685 = vmatpush3.bf16.msra.mxu1 %v7476_v17  ;;  %v7506_v17 = vld [vmem:[%s8735_s12 + $0x78] sm:$0xff]  }
 0x4a2   : > { %6686 = vmatprep.subr.bf16.mxu1 %v7477_v18  ;;  %v7507_v18 = vld [vmem:[%s8735_s12 + $0xa0] sm:$0xff]  }
 0x4a5   : > { %6687 = vmatpush3.bf16.msra.mxu1 %v7478_v19  ;;  %v7508_v19 = vld [vmem:[%s8735_s12 + $0xa8] sm:$0xff]  }
 0x4a6   : > { %6688 = vmatprep.subr.bf16.mxu1 %v7479_v20  ;;  %v7509_v20 = vld [vmem:[%s8735_s12 + $0xb0] sm:$0xff]  }
 0x4a9   : > { %6689 = vmatpush3.bf16.msra.mxu1 %v7480_v30  ;;  %v7510_v30 = vld [vmem:[%s8735_s12 + $0xb8] sm:$0xff]  }
 0x4aa   : > { %6690 = vmatprep.subr.bf16.mxu1 %v7481_v21  ;;  %v7511_v21 = vld [vmem:[%s8735_s12 + $0xc0] sm:$0xff]  }
 0x4ad   : > { %6691 = vmatpush3.bf16.msra.mxu1 %v7482_v22  ;;  %v7512_v22 = vld [vmem:[%s8735_s12 + $0xc8] sm:$0xff]  }
 0x4ae   : > { %6692 = vmatprep.subr.bf16.mxu1 %v7483_v23  ;;  %v7513_v23 = vld [vmem:[%s8735_s12 + $0xd0] sm:$0xff]  }
 0x4b1   : > { %6693 = vmatpush3.bf16.msra.mxu1 %v7484_v24  ;;  %v7514_v24 = vld [vmem:[%s8735_s12 + $0xd8] sm:$0xff]  }
 0x4b2   : > { %6694 = vmatprep.subr.bf16.mxu1 %v7485_v25  ;;  %v7515_v25 = vld [vmem:[%s8735_s12 + $0xe0] sm:$0xff]  }
 0x4b5   : > { %6695 = vmatpush3.bf16.msra.mxu1 %v7486_v26  ;;  %v7516_v26 = vld [vmem:[%s8735_s12 + $0xe8] sm:$0xff]  }
 0x4b6   : > { %6696 = vmatprep.subr.bf16.mxu1 %v7487_v27  ;;  %v7517_v27 = vld [vmem:[%s8735_s12 + $0xf0] sm:$0xff]  }
 0x4b9   : > { %6697 = vmatpush3.bf16.msra.mxu1 %v7488_v28  ;;  %v7518_v28 = vld [vmem:[%s8735_s12 + $0xf8] sm:$0xff]  }
 0x4bc   : > { %2903 = vmatmul.mubr.bf16.vlgmr.msra.gmra.mrb[16].mxu1 %v7893_v32  ;;  %v7492_v32 = vld [vmem:[%s8735_s12 + $0x40] sm:$0xff]  }
 0x4bd   : > { %6901 = vmatprep.mubr.msk.bf16.mxu1 %vm1131_vm1, %v7489_v29  ;;  %v7519_v29 = vld [vmem:[%s8736_s13 + $0x10] sm:$0xff]  }
 0x58f   : > { %v6698_v33 = vpop.f32.mrb[16].mxu1 }
 0x590   : > { %v6699_v34 = vpop.f32.mrb[17].mxu1 }
 0x591   : > { %v6700_v35 = vadd.f32 %v6699_v34, %v6698_v33  ;;  %v6701_v36 = vpop.f32.mrb[18].mxu1 }
 0x592   : > { %v6702_v37 = vpop.f32.mrb[19].mxu1 }
 0x593   : > { %v2915_v38 = vpack.c.bf16 %v6700_v35, %v6700_v35 }
 0x595   : > { %v2933_v39 = vsel %vm1138_vm2, %v2915_v38, 0  ;;  %7315 = vmatprep.subr.msk.bf16.mxu1 %vm1138_vm2, %v2915_v38 }
 0x596   : > { %6900 = vmatpush3.bf16.msra.mxu1 %v2933_v39 }
 0x597   : > { %6945 = vmatprep.subr.bf16.mxu1 %v7492_v32 }
 0x599   : > { %6902 = vmatmul.mubr.msk.bf16.vlgmr.msra.gmra.mrb[4].mxu1 %vm1131_vm1, %v7490_v40 }
 0x59a   : > { %6946 = vmatpush3.bf16.msra.mxu1 %v7492_v32 }
 0x59b   : > { %6947 = vmatprep.subr.bf16.mxu1 %v7494_v42 }
 0x59e   : > { %6948 = vmatpush3.bf16.msra.mxu1 %v7494_v42 }
 0x59f   : > { %6949 = vmatprep.subr.bf16.mxu1 %v7496_v44 }
 0x5a2   : > { %6950 = vmatpush3.bf16.msra.mxu1 %v7496_v44 }
 0x5a3   : > { %6951 = vmatprep.subr.bf16.mxu1 %v7498_v46 }
 0x5a6   : > { %6952 = vmatpush3.bf16.msra.mxu1 %v7498_v46 }
 0x5a7   : > { %6965 = vmatprep.subr.bf16.mxu1 %v7500_v48 }
 0x66c   : > { %v6903_v55 = vpop.f32.mrb[4].mxu1 }
 0x66d   : > { %v3014_v56 = vmul.f32 %v6903_v55, %v3005_v51  ;;  %v2969_v57 = vpop.f32.mrb[5].mxu1  ;;  %v7520_v55 = vld [vmem:[%s8736_s13 + $0x18] sm:$0xff]  }
 0x66e   : > { %v3012_v59 = vmul.f32 %v2995_v49, %v2969_v57  ;;  %v6904_v60 = vpop.f32.mrb[6].mxu1 }
 0x66f   : > { %v3042_v61 = vadd.f32 %v3033_v58, %v3014_v56  ;;  %v3015_v62 = vmul.f32 %v6904_v60, %v3010_v52  ;;  %v2972_v63 = vpop.f32.mrb[7].mxu1  ;;  %v7521_v56 = vld [vmem:[%s8736_s13] sm:$0xff]  }
 0x670   : > { %v3040_v1 = vadd.f32 %v3023_v53, %v3012_v59  ;;  %v3013_v3 = vmul.f32 %v3000_v50, %v2972_v63  ;;  %v7522_v63 = vld [vmem:[%s8736_s13 + $0x8] sm:$0xff]  }
 0x671   : > { %v3043_v4 = vadd.f32 %v3038_v0, %v3015_v62  ;;  %v3046_v6 = vmax.f32 %v3042_v61, 0.0  ;;  %v7523_v0 = vld [vmem:[%s8736_s13 + $0x20] sm:$0xff]  }
 0x672   : > { %v3041_v5 = vadd.f32 %v3028_v54, %v3013_v3  ;;  %v3044_v8 = vmax.f32 %v3040_v1, 0.0 }
 0x673   : > { %v3047_v7 = vmax.f32 %v3043_v4, 0.0 }
 0x674   : > { %v3045_v9 = vmax.f32 %v3041_v5, 0.0  ;;  %v7524_v5 = vld [vmem:[%s8736_s13 + $0x28] sm:$0xff]  }
 0x675   : > { %v8367_v10 = vpack.c.bf16 %v3047_v7, %v3046_v6 }
 0x676   : > { %v8369_v11 = vpack.c.bf16 %v3045_v9, %v3044_v8  ;;  %v7525_v8 = vld [vmem:[%s8736_s13 + $0x30] sm:$0xff]  }
 0x678   : > { %6913 = vmatprep.mubr.msk.bf16.mxu0 %vm3082_vm3, %v8369_v11  ;;  %6953 = vmatprep.mubr.msk.bf16.mxu1 %vm3082_vm3, %v8369_v11 }
 0x679   : > { %6914 = vmatmul.mubr.msk.bf16.vlgmr.msra.gmra.mrb[24].mxu0 %vm3082_vm3, %v8367_v10  ;;  %6954 = vmatmul.mubr.msk.bf16.vlgmr.msra.gmra.mrb[20].mxu1 %vm3082_vm3, %v8367_v10 }
 0x67a   : > { %6918 = vmatpush3.bf16.msra.mxu0 %v7499_v47  ;;  %6966 = vmatpush3.bf16.msra.mxu1 %v7500_v48 }
 0x67b   : > { %6925 = vmatprep.mubr.msk.bf16.mxu0 %vm3082_vm3, %v8369_v11  ;;  %6973 = vmatprep.mubr.msk.bf16.mxu1 %vm3082_vm3, %v8369_v11 }
 0x67c   : > { %6919 = vmatprep.subr.bf16.mxu0 %v7501_v12  ;;  %6967 = vmatprep.subr.bf16.mxu1 %v7502_v13 }
 0x67e   : > { %6920 = vmatpush3.bf16.msra.mxu0 %v7501_v12  ;;  %6968 = vmatpush3.bf16.msra.mxu1 %v7502_v13  ;;  %v7526_v12 = vld [vmem:[%s8735_s12 + $0x80] sm:$0xff]   ;;  %v7527_v13 = vld [vmem:[%s8736_s13 + $0x38] sm:$0xff]  }
 0x67f   : > { %6921 = vmatprep.subr.bf16.mxu0 %v7503_v14  ;;  %6969 = vmatprep.subr.bf16.mxu1 %v7504_v15 }
 0x682   : > { %6922 = vmatpush3.bf16.msra.mxu0 %v7503_v14  ;;  %6970 = vmatpush3.bf16.msra.mxu1 %v7504_v15  ;;  %v7528_v15 = vld [vmem:[%s8735_s12 + $0x88] sm:$0xff]  }
 0x683   : > { %6923 = vmatprep.subr.bf16.mxu0 %v7505_v16  ;;  %6971 = vmatprep.subr.bf16.mxu1 %v7506_v17 }
 0x686   : > { %6924 = vmatpush3.bf16.msra.mxu0 %v7505_v16  ;;  %6972 = vmatpush3.bf16.msra.mxu1 %v7506_v17 }
 0x687   : > { %7005 = vmatprep.subr.bf16.mxu1 %v7507_v18 }
 0x689   : > { %6926 = vmatmul.mubr.msk.bf16.vlgmr.msra.gmra.mrb[28].mxu0 %vm3082_vm3, %v8367_v10  ;;  %6974 = vmatmul.mubr.msk.bf16.vlgmr.msra.gmra.mrb[24].mxu1 %vm3082_vm3, %v8367_v10 }
 0x68a   : > { %7006 = vmatpush3.bf16.msra.mxu1 %v7507_v18  ;;  %7013 = vmatprep.mubr.msk.bf16.mxu1 %vm3082_vm3, %v8369_v11 }
 0x68b   : > { %7007 = vmatprep.subr.bf16.mxu1 %v7508_v19  ;;  %6933 = vmatprep.mubr.msk.bf16.mxu0 %vm3243_vm4, %v7519_v29  ;;  %v7532_v29 = vld [vmem:[%s8736_s13 + $0x48] sm:$0xff]  }
 0x68e   : > { %7008 = vmatpush3.bf16.msra.mxu1 %v7508_v19 }
 0x68f   : > { %7009 = vmatprep.subr.bf16.mxu1 %v7509_v20 }
 0x692   : > { %7010 = vmatpush3.bf16.msra.mxu1 %v7509_v20 }
 0x693   : > { %7011 = vmatprep.subr.bf16.mxu1 %v7510_v30 }
 0x696   : > { %7012 = vmatpush3.bf16.msra.mxu1 %v7510_v30  ;;  %v7529_v30 = vld [vmem:[%s8735_s12 + $0x90] sm:$0xff]  }
 0x697   : > { %7025 = vmatprep.subr.bf16.mxu1 %v7511_v21 }
 0x699   : > { %7014 = vmatmul.mubr.msk.bf16.vlgmr.msra.gmra.mrb[28].mxu1 %vm3082_vm3, %v8367_v10 }
 0x69a   : > { %7026 = vmatpush3.bf16.msra.mxu1 %v7511_v21  ;;  %7033 = vmatprep.mubr.msk.bf16.mxu1 %vm3082_vm3, %v8369_v11  ;;  %v7530_v21 = vld [vmem:[%s8735_s12 + $0x98] sm:$0xff]  }
 0x69b   : > { %7027 = vmatprep.subr.bf16.mxu1 %v7512_v22 }
 0x69e   : > { %7028 = vmatpush3.bf16.msra.mxu1 %v7512_v22  ;;  %v7531_v22 = vld [vmem:[%s8736_s13 + $0x40] sm:$0xff]  }
 0x69f   : > { %7029 = vmatprep.subr.bf16.mxu1 %v7513_v23 }
 0x6a2   : > { %7030 = vmatpush3.bf16.msra.mxu1 %v7513_v23 }
 0x6a3   : > { %7031 = vmatprep.subr.bf16.mxu1 %v7514_v24 }
 0x6a6   : > { %7032 = vmatpush3.bf16.msra.mxu1 %v7514_v24 }
 0x6a7   : > { %7045 = vmatprep.subr.bf16.mxu1 %v7515_v25 }
 0x6a9   : > { %7034 = vmatmul.mubr.msk.bf16.vlgmr.msra.gmra.mrb[32].mxu1 %vm3082_vm3, %v8367_v10 }
 0x6aa   : > { %7046 = vmatpush3.bf16.msra.mxu1 %v7515_v25  ;;  %7053 = vmatprep.mubr.msk.bf16.mxu1 %vm3082_vm3, %v8369_v11 }
 0x6ab   : > { %7047 = vmatprep.subr.bf16.mxu1 %v7516_v26 }
 0x6ae   : > { %7048 = vmatpush3.bf16.msra.mxu1 %v7516_v26 }
 0x6af   : > { %7049 = vmatprep.subr.bf16.mxu1 %v7517_v27 }
 0x6b2   : > { %7050 = vmatpush3.bf16.msra.mxu1 %v7517_v27 }
 0x6b3   : > { %7051 = vmatprep.subr.bf16.mxu1 %v7518_v28 }
 0x6b6   : > { %7052 = vmatpush3.bf16.msra.mxu1 %v7518_v28 }
 0x6b9   : > { %7054 = vmatmul.mubr.msk.bf16.vlgmr.msra.gmra.mrb[36].mxu1 %vm3082_vm3, %v8367_v10 }
 0x74c   : > { %v6915_v31 = vpop.f32.mrb[24].mxu0  ;;  %v6955_v33 = vpop.f32.mrb[20].mxu1 }
 0x74d   : > { %v3123_v34 = vpop.f32.mrb[25].mxu0  ;;  %v3431_v35 = vpop.f32.mrb[21].mxu1 }
 0x74e   : > { %v6916_v36 = vpop.f32.mrb[26].mxu0  ;;  %v6956_v37 = vpop.f32.mrb[22].mxu1 }
 0x74f   : > { %v3143_v38 = vpack.c.bf16 %v6916_v36, %v6915_v31  ;;  %v3452_v32 = vpack.c.bf16 %v6956_v37, %v6955_v33  ;;  %v3126_v39 = vpop.f32.mrb[27].mxu0  ;;  %v3434_v40 = vpop.f32.mrb[23].mxu1  ;;  %v7533_v31 = vld [vmem:[%s8736_s13 + $0x50] sm:$0xff]   ;;  %v7534_v33 = vld [vmem:[%s8736_s13 + $0x58] sm:$0xff]   ;;  %v7538_v37 = vld [vmem:[%s8735_s12 + $0x100] sm:$0xff]  }
 0x750   : > { %v3142_v41 = vpack.c.bf16 %v3126_v39, %v3123_v34  ;;  %v3451_v42 = vpack.c.bf16 %v3434_v40, %v3431_v35  ;;  %v7535_v34 = vld [vmem:[%s8736_s13 + $0x60] sm:$0xff]   ;;  %v7536_v35 = vld [vmem:[%s8736_s13 + $0x68] sm:$0xff]   ;;  %v7537_v36 = vld [vmem:[%s8736_s13 + $0x70] sm:$0xff]  }
 0x751   : > { %v7541_v39 = vld [vmem:[%s8735_s12 + $0x110] sm:$0xff]   ;;  %v7542_v40 = vld [vmem:[%s8735_s12 + $0x118] sm:$0xff]  }
 0x75c   : > { %v6927_v43 = vpop.f32.mrb[28].mxu0  ;;  %v6975_v44 = vpop.f32.mrb[24].mxu1 }
 0x75d   : > { %v3211_v45 = vpop.f32.mrb[29].mxu0  ;;  %v3589_v46 = vpop.f32.mrb[25].mxu1 }
 0x75e   : > { %v6928_v47 = vpop.f32.mrb[30].mxu0  ;;  %v6976_v48 = vpop.f32.mrb[26].mxu1 }
 0x75f   : > { %v3232_v49 = vpack.c.bf16 %v6928_v47, %v6927_v43  ;;  %v3610_v50 = vpack.c.bf16 %v6976_v48, %v6975_v44  ;;  %v3214_v51 = vpop.f32.mrb[31].mxu0  ;;  %v3592_v52 = vpop.f32.mrb[27].mxu1  ;;  %v7544_v47 = vld [vmem:[%s8736_s13 + $0x88] sm:$0xff]   ;;  %v7546_v48 = vld [vmem:[%s8739_s16 + $0x10] sm:$0xff]  }
 0x760   : > { %v3231_v53 = vpack.c.bf16 %v3214_v51, %v3211_v45  ;;  %v3609_v54 = vpack.c.bf16 %v3592_v52, %v3589_v46  ;;  %v4477_v51 = vpop.permute.xlu0 %4476  ;;  %v4482_v52 = vpop.permute.xlu1 %4481 }
 0x762   : > { %6929 = vmatprep.subr.bf16.mxu0 %v3231_v53 }
 0x763   : > { %6930 = vmatpush3.bf16.msra.mxu0 %v3231_v53 }
 0x764   : > { %6931 = vmatprep.subr.bf16.mxu0 %v3232_v49  ;;  %v4487_v53 = vpop.permute.xlu0 %4486 }
 0x767   : > { %6932 = vmatpush3.bf16.msra.mxu0 %v3232_v49  ;;  %v7547_v49 = vld [vmem:[%s8739_s16 + $0x8] sm:$0xff]  }
 0x768   : > { %6937 = vmatprep.subr.bf16.mxu0 %v3142_v41 }
 0x76a   : > { %6934 = vmatmul.mubr.msk.bf16.vlgmr.msra.gmra.mrb[32].mxu0 %vm3243_vm4, %v7520_v55  ;;  %v4505_v55 = vpop.permute.xlu0 %4504 }
 0x76b   : > { %6938 = vmatpush3.bf16.msra.mxu0 %v3142_v41  ;;  %6941 = vmatprep.mubr.msk.bf16.mxu0 %vm3243_vm4, %v7521_v56 }
 0x76c   : > { %6939 = vmatprep.subr.bf16.mxu0 %v3143_v38  ;;  %v7015_v57 = vpop.f32.mrb[28].mxu1 }
 0x76d   : > { %v3905_v58 = vpop.f32.mrb[29].mxu1 }
 0x76e   : > { %v7016_v59 = vpop.f32.mrb[30].mxu1 }
 0x76f   : > { %v8465_v60 = vpack.c.bf16 %v7016_v59, %v7015_v57  ;;  %6940 = vmatpush3.bf16.msra.mxu0 %v3143_v38  ;;  %v3908_v61 = vpop.f32.mrb[31].mxu1  ;;  %v7539_v38 = vld [vmem:[%s8736_s13 + $0x78] sm:$0xff]  }
 0x770   : > { %v3925_v62 = vpack.c.bf16 %v3908_v61, %v3905_v58  ;;  %6957 = vmatprep.subr.bf16.mxu0 %v3451_v42 }
 0x776   : > { %6942 = vmatmul.mubr.msk.bf16.vlgmr.msra.gmra.mrb[32].mxu0 %vm3243_vm4, %v7522_v63 }
 0x777   : > { %6958 = vmatpush3.bf16.msra.mxu0 %v3451_v42  ;;  %6961 = vmatprep.mubr.msk.bf16.mxu0 %vm3243_vm4, %v7523_v0 }
 0x778   : > { %6959 = vmatprep.subr.bf16.mxu0 %v3452_v32 }
 0x77b   : > { %6960 = vmatpush3.bf16.msra.mxu0 %v3452_v32  ;;  %v7540_v32 = vld [vmem:[%s8735_s12 + $0x108] sm:$0xff]  }
 0x77c   : > { %6977 = vmatprep.subr.bf16.mxu0 %v3609_v54  ;;  %v7035_v1 = vpop.f32.mrb[32].mxu1 }
 0x77d   : > { %v4063_v3 = vpop.f32.mrb[33].mxu1 }
 0x77e   : > { %v7036_v4 = vpop.f32.mrb[34].mxu1 }
 0x77f   : > { %v4084_v6 = vpack.c.bf16 %v7036_v4, %v7035_v1  ;;  %v4066_v7 = vpop.f32.mrb[35].mxu1 }
 0x780   : > { %v4083_v9 = vpack.c.bf16 %v4066_v7, %v4063_v3 }
 0x782   : > { %6962 = vmatmul.mubr.msk.bf16.vlgmr.msra.gmra.mrb[32].mxu0 %vm3243_vm4, %v7524_v5 }
 0x783   : > { %6978 = vmatpush3.bf16.msra.mxu0 %v3609_v54  ;;  %6981 = vmatprep.mubr.msk.bf16.mxu0 %vm3243_vm4, %v7525_v8  ;;  %v4492_v54 = vpop.permute.xlu1 %4491 }
 0x784   : > { %6979 = vmatprep.subr.bf16.mxu0 %v3610_v50 }
 0x787   : > { %6980 = vmatpush3.bf16.msra.mxu0 %v3610_v50  ;;  %v7548_v50 = vld [vmem:[%s8739_s16 + $0x18] sm:$0xff]   ;;  %v4510_v56 = vpop.permute.xlu1 %4509 }
 0x788   : > { %6985 = vmatprep.subr.bf16.mxu0 %v7526_v12 }
 0x78b   : > { %v4520_v3 = vpop.permute.xlu1 %4519 }
 0x78c   : > { %v7055_v14 = vpop.f32.mrb[36].mxu1 }
 0x78d   : > { %v4221_v16 = vpop.f32.mrb[37].mxu1 }
 0x78e   : > { %6982 = vmatmul.mubr.msk.bf16.vlgmr.msra.gmra.mrb[32].mxu0 %vm3243_vm4, %v7527_v13  ;;  %v7056_v17 = vpop.f32.mrb[38].mxu1 }
 0x78f   : > { %6986 = vmatpush3.bf16.msra.mxu0 %v7526_v12  ;;  %v4242_v18 = vpack.c.bf16 %v7056_v17, %v7055_v14  ;;  %6993 = vmatprep.mubr.msk.bf16.mxu0 %vm3082_vm3, %v8369_v11  ;;  %v4224_v19 = vpop.f32.mrb[39].mxu1  ;;  %v7550_v17 = vld [vmem:[%s8739_s16 + $0x28] sm:$0xff]  }
 0x790   : > { %v4241_v20 = vpack.c.bf16 %v4224_v19, %v4221_v16  ;;  %6987 = vmatprep.subr.bf16.mxu0 %v7528_v15  ;;  %v7549_v16 = vld [vmem:[%s8739_s16 + $0x20] sm:$0xff]   ;;  %v7552_v19 = vld [vmem:[%s8739_s16 + $0x38] sm:$0xff]  }
 0x793   : > { %6988 = vmatpush3.bf16.msra.mxu0 %v7528_v15 }
 0x794   : > { %6989 = vmatprep.subr.bf16.mxu0 %v7529_v30 }
 0x797   : > { %6990 = vmatpush3.bf16.msra.mxu0 %v7529_v30  ;;  %v7580_v30 = vmov 0.0  }
 0x798   : > { %6991 = vmatprep.subr.bf16.mxu0 %v7530_v21 }
 0x79b   : > { %6992 = vmatpush3.bf16.msra.mxu0 %v7530_v21  ;;  %v7554_v21 = vld [vmem:[%s8742_s19] ss:$8 sps:$4 sm:$0xff]  }
 0x79e   : > { %6994 = vmatmul.mubr.msk.bf16.vlgmr.msra.gmra.mrb[36].mxu0 %vm3082_vm3, %v8367_v10 }
 0x79f   : > { %7001 = vmatprep.mubr.msk.bf16.mxu0 %vm3243_vm4, %v7531_v22  ;;  %v7556_v22 = vld [vmem:[%s8742_s19 + $0x4] ss:$8 sps:$4 sm:$0xff]  }
 0x871   : > { %v6995_v23 = vpop.f32.mrb[36].mxu0 }
 0x872   : > { %v3747_v24 = vpop.f32.mrb[37].mxu0 }
 0x873   : > { %v6996_v25 = vpop.f32.mrb[38].mxu0 }
 0x874   : > { %v3768_v26 = vpack.c.bf16 %v6996_v25, %v6995_v23  ;;  %v3750_v27 = vpop.f32.mrb[39].mxu0  ;;  %v7559_v23 = vld [vmem:[%s8742_s19 + $0x14] ss:$8 sps:$4 sm:$0xff]  }
 0x875   : > { %v3767_v28 = vpack.c.bf16 %v3750_v27, %v3747_v24  ;;  %v7557_v24 = vld [vmem:[%s8742_s19 + $0x10] ss:$8 sps:$4 sm:$0xff]  }
 0x877   : > { %6997 = vmatprep.subr.bf16.mxu0 %v3767_v28 }
 0x878   : > { %6998 = vmatpush3.bf16.msra.mxu0 %v3767_v28 }
 0x879   : > { %6999 = vmatprep.subr.bf16.mxu0 %v3768_v26 }
 0x87c   : > { %7000 = vmatpush3.bf16.msra.mxu0 %v3768_v26 }
 0x87d   : > { %7017 = vmatprep.subr.bf16.mxu0 %v3925_v62 }
 0x87f   : > { %7002 = vmatmul.mubr.msk.bf16.vlgmr.msra.gmra.mrb[32].mxu0 %vm3243_vm4, %v7532_v29 }
 0x880   : > { %7018 = vmatpush3.bf16.msra.mxu0 %v3925_v62  ;;  %7021 = vmatprep.mubr.msk.bf16.mxu0 %vm3243_vm4, %v7533_v31 }
 0x881   : > { %7019 = vmatprep.subr.bf16.mxu0 %v8465_v60 }
 0x884   : > { %7020 = vmatpush3.bf16.msra.mxu0 %v8465_v60  ;;  %v4515_v60 = vpop.permute.xlu0 %4514 }
 0x885   : > { %7037 = vmatprep.subr.bf16.mxu0 %v4083_v9 }
 0x88b   : > { %7022 = vmatmul.mubr.msk.bf16.vlgmr.msra.gmra.mrb[32].mxu0 %vm3243_vm4, %v7534_v33 }
 0x88c   : > { %7038 = vmatpush3.bf16.msra.mxu0 %v4083_v9  ;;  %7041 = vmatprep.mubr.msk.bf16.mxu0 %vm3243_vm4, %v7535_v34 }
 0x88d   : > { %7039 = vmatprep.subr.bf16.mxu0 %v4084_v6 }
 0x890   : > { %7040 = vmatpush3.bf16.msra.mxu0 %v4084_v6 }
 0x891   : > { %7057 = vmatprep.subr.bf16.mxu0 %v4241_v20 }
 0x897   : > { %7042 = vmatmul.mubr.msk.bf16.vlgmr.msra.gmra.mrb[32].mxu0 %vm3243_vm4, %v7536_v35 }
 0x898   : > { %7058 = vmatpush3.bf16.msra.mxu0 %v4241_v20  ;;  %7061 = vmatprep.mubr.msk.bf16.mxu0 %vm3243_vm4, %v7537_v36  ;;  %v7553_v20 = vld [vmem:[%s8739_s16 + $0x40] sm:$0xff]  }
 0x899   : > { %7059 = vmatprep.subr.bf16.mxu0 %v4242_v18 }
 0x89c   : > { %7060 = vmatpush3.bf16.msra.mxu0 %v4242_v18  ;;  %v7551_v18 = vld [vmem:[%s8739_s16 + $0x30] sm:$0xff]  }
 0x89d   : > { %7065 = vmatprep.subr.bf16.mxu0 %v7538_v37 }
 0x8a3   : > { %7062 = vmatmul.mubr.msk.bf16.vlgmr.msra.gmra.mrb[32].mxu0 %vm3243_vm4, %v7539_v38 }
 0x8a4   : > { %7066 = vmatpush3.bf16.msra.mxu0 %v7538_v37  ;;  %7073 = vmatprep.mubr.msk.bf16.mxu0 %vm3082_vm3, %v8369_v11  ;;  %v7543_v11 = vld [vmem:[%s8736_s13 + $0x80] sm:$0xff]  }
 0x8a5   : > { %7067 = vmatprep.subr.bf16.mxu0 %v7540_v32 }
 0x8a8   : > { %7068 = vmatpush3.bf16.msra.mxu0 %v7540_v32 }
 0x8a9   : > { %7069 = vmatprep.subr.bf16.mxu0 %v7541_v39 }
 0x8ac   : > { %7070 = vmatpush3.bf16.msra.mxu0 %v7541_v39 }
 0x8ad   : > { %7071 = vmatprep.subr.bf16.mxu0 %v7542_v40 }
 0x8b0   : > { %7072 = vmatpush3.bf16.msra.mxu0 %v7542_v40 }
 0x8b3   : > { %7074 = vmatmul.mubr.msk.bf16.vlgmr.msra.gmra.mrb[40].mxu0 %vm3082_vm3, %v8367_v10  ;;  %v7545_v10 = vld [vmem:[%s8739_s16] sm:$0xff]  }
 0x8b4   : > { %7081 = vmatprep.mubr.msk.bf16.mxu0 %vm3243_vm4, %v7543_v11  ;;  %7085 = vmatprep.subr.bf16.mxu1 %v7545_v10 }
 0x8b5   : > { %7086 = vmatpush3.bf16.msra.mxu1 %v7545_v10 }
 0x8b6   : > { %7091 = vmatprep.subr.bf16.mxu1 %v7547_v49 }
 0x986   : > { %v7075_v41 = vpop.f32.mrb[40].mxu0 }
 0x987   : > { %v4379_v42 = vpop.f32.mrb[41].mxu0 }
 0x988   : > { %v7076_v43 = vpop.f32.mrb[42].mxu0 }
 0x989   : > { %v4400_v44 = vpack.c.bf16 %v7076_v43, %v7075_v41  ;;  %v4382_v45 = vpop.f32.mrb[43].mxu0 }
 0x98a   : > { %v4399_v46 = vpack.c.bf16 %v4382_v45, %v4379_v42 }
 0x98c   : > { %7077 = vmatprep.subr.bf16.mxu0 %v4399_v46 }
 0x98d   : > { %7078 = vmatpush3.bf16.msra.mxu0 %v4399_v46 }
 0x98e   : > { %7079 = vmatprep.subr.bf16.mxu0 %v4400_v44 }
 0x991   : > { %7080 = vmatpush3.bf16.msra.mxu0 %v4400_v44 }
 0x992   : > { %7113 = vmatprep.subr.bf16.mxu0 %v7546_v48 }
 0x994   : > { %7082 = vmatmul.mubr.msk.bf16.vlgmr.msra.gmra.mrb[32].mxu0 %vm3243_vm4, %v7544_v47 }
 0x995   : > { %7114 = vmatpush3.bf16.msra.mxu0 %v7546_v48 }
 0x996   : > { %7127 = vmatprep.subr.bf16.mxu0 %v7548_v50 }
 0xa67   : > { %v7083_v57 = vpop.f32.mrb[32].mxu0 }
 0xa68   : > { %v4496_v58 = vmul.f32 %v7083_v57, %v4487_v53  ;;  %v4451_v59 = vpop.f32.mrb[33].mxu0 }
 0xa69   : > { %v4494_v61 = vmul.f32 %v4477_v51, %v4451_v59  ;;  %v7084_v62 = vpop.f32.mrb[34].mxu0  ;;  %v6414_v51 = vld [vmem:[%s8740_s17 + $0x4] sm:$0xf] }
 0xa6a   : > { %v4524_v63 = vadd.f32 %v4515_v60, %v4496_v58  ;;  %v4497_v0 = vmul.f32 %v7084_v62, %v4492_v54  ;;  %v4454_v1 = vpop.f32.mrb[35].mxu0 }
 0xa6b   : > { %v4522_v4 = vadd.f32 %v4505_v55, %v4494_v61  ;;  %v4495_v5 = vmul.f32 %v4482_v52, %v4454_v1  ;;  %v4595_v61 = vld [vmem:[%s8740_s17] sm:$0xf] }
 0xa6c   : > { %v4525_v6 = vadd.f32 %v4520_v3, %v4497_v0  ;;  %v4528_v8 = vmax.f32 %v4524_v63, 0.0 }
 0xa6d   : > { %v4523_v7 = vadd.f32 %v4510_v56, %v4495_v5  ;;  %v4526_v12 = vmax.f32 %v4522_v4, 0.0 }
 0xa6e   : > { %v4529_v9 = vmax.f32 %v4525_v6, 0.0 }
 0xa6f   : > { %v4527_v13 = vmax.f32 %v4523_v7, 0.0 }
 0xa70   : > { %v4531_v14 = vpack.c.bf16 %v4529_v9, %v4528_v8  ;;  %v6422_v8 = vld [vmem:[%s8740_s17 + $0x8] sm:$0xf] }
 0xa71   : > { %v4530_v15 = vpack.c.bf16 %v4527_v13, %v4526_v12 }
 0xa73   : > { %7087 = vmatprep.mubr.msk.bf16.mxu1 %vm708_vm0, %v4530_v15  ;;  %7115 = vmatprep.mubr.msk.bf16.mxu0 %vm708_vm0, %v4530_v15 }
 0xa74   : > { %7088 = vmatmul.mubr.msk.bf16.vlgmr.msra.gmra.mrb[40].mxu1 %vm708_vm0, %v4531_v14  ;;  %7116 = vmatmul.mubr.msk.bf16.vlgmr.msra.gmra.mrb[44].mxu0 %vm708_vm0, %v4531_v14 }
 0xa75   : > { %7093 = vmatprep.mubr.msk.bf16.mxu1 %vm708_vm0, %v4530_v15  ;;  %7129 = vmatprep.mubr.msk.bf16.mxu0 %vm708_vm0, %v4530_v15 }
 0xa76   : > { %7092 = vmatpush3.bf16.msra.mxu1 %v7547_v49  ;;  %7128 = vmatpush3.bf16.msra.mxu0 %v7548_v50 }
 0xa77   : > { %7141 = vmatprep.subr.bf16.mxu0 %v7549_v16  ;;  %7097 = vmatprep.subr.bf16.mxu1 %v7580_v30 }
 0xa7c   : > { %7094 = vmatmul.mubr.msk.bf16.vlgmr.msra.gmra.mrb[44].mxu1 %vm708_vm0, %v4531_v14  ;;  %7130 = vmatmul.mubr.msk.bf16.vlgmr.msra.gmra.mrb[48].mxu0 %vm708_vm0, %v4531_v14 }
 0xa7d   : > { %7143 = vmatprep.mubr.msk.bf16.mxu0 %vm708_vm0, %v4530_v15  ;;  %7142 = vmatpush3.bf16.msra.mxu0 %v7549_v16 }
 0xa7e   : > { %7155 = vmatprep.subr.bf16.mxu0 %v7550_v17  ;;  %7101 = vmatprep.mubr.msk.bf16.mxu1 %vm7581_vm5, %v7580_v30 }
 0xa84   : > { %7144 = vmatmul.mubr.msk.bf16.vlgmr.msra.gmra.mrb[52].mxu0 %vm708_vm0, %v4531_v14 }
 0xa85   : > { %7157 = vmatprep.mubr.msk.bf16.mxu0 %vm708_vm0, %v4530_v15  ;;  %7156 = vmatpush3.bf16.msra.mxu0 %v7550_v17 }
 0xa86   : > { %7169 = vmatprep.subr.bf16.mxu0 %v7551_v18 }
 0xa8c   : > { %7158 = vmatmul.mubr.msk.bf16.vlgmr.msra.gmra.mrb[56].mxu0 %vm708_vm0, %v4531_v14 }
 0xa8d   : > { %7171 = vmatprep.mubr.msk.bf16.mxu0 %vm708_vm0, %v4530_v15  ;;  %7170 = vmatpush3.bf16.msra.mxu0 %v7551_v18 }
 0xa8e   : > { %7183 = vmatprep.subr.bf16.mxu0 %v7552_v19 }
 0xa94   : > { %7172 = vmatmul.mubr.msk.bf16.vlgmr.msra.gmra.mrb[60].mxu0 %vm708_vm0, %v4531_v14 }
 0xa95   : > { %7185 = vmatprep.mubr.msk.bf16.mxu0 %vm708_vm0, %v4530_v15  ;;  %7184 = vmatpush3.bf16.msra.mxu0 %v7552_v19 }
 0xa96   : > { %7197 = vmatprep.subr.bf16.mxu0 %v7553_v20 }
 0xa9c   : > { %7186 = vmatmul.mubr.msk.bf16.vlgmr.msra.gmra.mrb[64].mxu0 %vm708_vm0, %v4531_v14 }
 0xa9d   : > { %7199 = vmatprep.mubr.msk.bf16.mxu0 %vm708_vm0, %v4530_v15  ;;  %7198 = vmatpush3.bf16.msra.mxu0 %v7553_v20  ;;  %v6429_v20 = vld [vmem:[%s8740_s17 + $0xc] sm:$0xf] }
 0xa9e   : > { %5555 = vmatprep.subr.bf16.mxu0 %v7556_v22  ;;  %v6443_v22 = vld [vmem:[%s8740_s17 + $0x14] sm:$0xf] }
 0xaa4   : > { %7200 = vmatmul.mubr.msk.bf16.vlgmr.msra.gmra.mrb[68].mxu0 %vm708_vm0, %v4531_v14 }
 0xaa5   : > { %5587 = vmatprep.mubr.bf16.mxu0 %v7579_v2  ;;  %5556 = vmatpush1.bf16.msra.mxu0 %v7554_v21  ;;  %v6436_v21 = vld [vmem:[%s8740_s17 + $0x10] sm:$0xf] }
 0xaa6   : > { %5557 = vmatprep.subr.bf16.mxu0 %v7559_v23  ;;  %v6450_v23 = vld [vmem:[%s8740_s17 + $0x18] sm:$0xf] }
 0xaa9   : > { %5558 = vmatpush1.bf16.msra.mxu0 %v7557_v24  ;;  %v6457_v24 = vld [vmem:[%s8740_s17 + $0x1c] sm:$0xf] }
 0xb47   : > { %v7089_v25 = vpop.f32.mrb[40].mxu1  ;;  %v7117_v26 = vpop.f32.mrb[44].mxu0 }
 0xb48   : > { %v4580_v27 = vpop.f32.mrb[41].mxu1  ;;  %v4789_v28 = vpop.f32.mrb[45].mxu0 }
 0xb49   : > { %v7090_v29 = vpop.f32.mrb[42].mxu1  ;;  %v7118_v31 = vpop.f32.mrb[46].mxu0 }
 0xb4a   : > { %v4597_v33 = vpack.c.bf16 %v7090_v29, %v7089_v25  ;;  %v4807_v34 = vpack.c.bf16 %v7118_v31, %v7117_v26  ;;  %v4583_v35 = vpop.f32.mrb[43].mxu1  ;;  %v4792_v36 = vpop.f32.mrb[47].mxu0  ;;  %v6464_v25 = vld [vmem:[%s8740_s17 + $0x20] sm:$0xf]  ;;  %v7562_v26 = vld [vmem:[%s8742_s19 + $0x24] ss:$8 sps:$4 sm:$0xff]  }
 0xb4b   : > { %v4596_v37 = vpack.c.bf16 %v4583_v35, %v4580_v27  ;;  %v4806_v38 = vpack.c.bf16 %v4792_v36, %v4789_v28  ;;  %v7560_v27 = vld [vmem:[%s8742_s19 + $0x20] ss:$8 sps:$4 sm:$0xff]   ;;  %5559 = vmatprep.subr.bf16.mxu0 %v7562_v26  ;;  %v7563_v28 = vld [vmem:[%s8742_s19 + $0x30] ss:$8 sps:$4 sm:$0xff]  }
 0xb4c   : > { %5560 = vmatpush1.bf16.msra.mxu0 %v7560_v27 }
 0xb4f   : > { %v7095_v32 = vpop.f32.mrb[44].mxu1  ;;  %v7131_v39 = vpop.f32.mrb[48].mxu0 }
 0xb50   : > { %v4641_v40 = vpop.f32.mrb[45].mxu1  ;;  %v4895_v11 = vpop.f32.mrb[49].mxu0 }
 0xb51   : > { %v7096_v41 = vpop.f32.mrb[46].mxu1  ;;  %v7132_v42 = vpop.f32.mrb[50].mxu0 }
 0xb52   : > { %v4659_v43 = vpack.c.bf16 %v7096_v41, %v7095_v32  ;;  %v4913_v44 = vpack.c.bf16 %v7132_v42, %v7131_v39  ;;  %v4644_v45 = vpop.f32.mrb[47].mxu1  ;;  %v4898_v46 = vpop.f32.mrb[51].mxu0 }
 0xb53   : > { %v4658_v47 = vpack.c.bf16 %v4644_v45, %v4641_v40  ;;  %v4912_v10 = vpack.c.bf16 %v4898_v46, %v4895_v11  ;;  %v7566_v45 = vld [vmem:[%s8741_s18] sm:$0xff]  }
 0xb55   : > { %7098 = vmatpush3.bf16.msra.mxu1 %v4658_v47  ;;  %v7567_v47 = vld [vmem:[%s7812_s21] sm:$0xff] }
 0xb56   : > { %7099 = vmatprep.subr.bf16.mxu1 %v7580_v30 }
 0xb57   : > { %v7145_v48 = vpop.f32.mrb[52].mxu0 }
 0xb58   : > { %v5001_v49 = vpop.f32.mrb[53].mxu0 }
 0xb59   : > { %7100 = vmatpush3.bf16.msra.mxu1 %v4659_v43  ;;  %v7146_v50 = vpop.f32.mrb[54].mxu0 }
 0xb5a   : > { %v5019_v52 = vpack.c.bf16 %v7146_v50, %v7145_v48  ;;  %v5004_v53 = vpop.f32.mrb[55].mxu0  ;;  %7105 = vmatprep.subr.bf16.mxu1 %v7580_v30 }
 0xb5b   : > { %v5018_v54 = vpack.c.bf16 %v5004_v53, %v5001_v49  ;;  %v7568_v49 = vld [vmem:[%s7812_s21 + $0x8] sm:$0xff] }
 0xb5c   : > { %7102 = vmatmul.mubr.msk.bf16.vlgmr.msra.gmra.mrb[48].mxu1 %vm3243_vm4, %v6414_v51 }
 0xb5d   : > { %7106 = vmatpush3.bf16.msra.mxu1 %v4596_v37  ;;  %7109 = vmatprep.mubr.msk.bf16.mxu1 %vm7581_vm5, %v7580_v30 }
 0xb5e   : > { %7107 = vmatprep.subr.bf16.mxu1 %v7580_v30 }
 0xb5f   : > { %v7159_v55 = vpop.f32.mrb[56].mxu0 }
 0xb60   : > { %v5107_v56 = vpop.f32.mrb[57].mxu0 }
 0xb61   : > { %7108 = vmatpush3.bf16.msra.mxu1 %v4597_v33  ;;  %v7160_v57 = vpop.f32.mrb[58].mxu0 }
 0xb62   : > { %v5125_v58 = vpack.c.bf16 %v7160_v57, %v7159_v55  ;;  %v5110_v59 = vpop.f32.mrb[59].mxu0  ;;  %7119 = vmatprep.subr.bf16.mxu1 %v7580_v30  ;;  %v7570_v55 = vld [vmem:[%s7812_s21 + $0x18] sm:$0xff] }
 0xb63   : > { %v5124_v60 = vpack.c.bf16 %v5110_v59, %v5107_v56 }
 0xb67   : > { %v7173_v62 = vpop.f32.mrb[60].mxu0 }
 0xb68   : > { %7110 = vmatmul.mubr.msk.bf16.vlgmr.msra.gmra.mrb[48].mxu1 %vm3243_vm4, %v4595_v61  ;;  %v5213_v63 = vpop.f32.mrb[61].mxu0 }
 0xb69   : > { %7120 = vmatpush3.bf16.msra.mxu1 %v4806_v38  ;;  %v7174_v0 = vpop.f32.mrb[62].mxu0  ;;  %7123 = vmatprep.mubr.msk.bf16.mxu1 %vm7581_vm5, %v7580_v30 }
 0xb6a   : > { %v5231_v1 = vpack.c.bf16 %v7174_v0, %v7173_v62  ;;  %v5216_v3 = vpop.f32.mrb[63].mxu0  ;;  %7121 = vmatprep.subr.bf16.mxu1 %v7580_v30 }
 0xb6b   : > { %v5230_v4 = vpack.c.bf16 %v5216_v3, %v5213_v63 }
 0xb6d   : > { %7122 = vmatpush3.bf16.msra.mxu1 %v4807_v34  ;;  %v5499_v34 = vpop.permute.xlu1 %5498 }
 0xb6e   : > { %7133 = vmatprep.subr.bf16.mxu1 %v7580_v30 }
 0xb6f   : > { %v7187_v5 = vpop.f32.mrb[64].mxu0 }
 0xb70   : > { %v5319_v6 = vpop.f32.mrb[65].mxu0 }
 0xb71   : > { %v7188_v7 = vpop.f32.mrb[66].mxu0 }
 0xb72   : > { %v5337_v9 = vpack.c.bf16 %v7188_v7, %v7187_v5  ;;  %v5322_v12 = vpop.f32.mrb[67].mxu0 }
 0xb73   : > { %v5336_v13 = vpack.c.bf16 %v5322_v12, %v5319_v6 }
 0xb74   : > { %7124 = vmatmul.mubr.msk.bf16.vlgmr.msra.gmra.mrb[48].mxu1 %vm3243_vm4, %v6422_v8 }
 0xb75   : > { %7134 = vmatpush3.bf16.msra.mxu1 %v4912_v10  ;;  %7137 = vmatprep.mubr.msk.bf16.mxu1 %vm7581_vm5, %v7580_v30 }
 0xb76   : > { %7135 = vmatprep.subr.bf16.mxu1 %v7580_v30 }
 0xb77   : > { %v7201_v14 = vpop.f32.mrb[68].mxu0 }
 0xb78   : > { %v5425_v15 = vpop.f32.mrb[69].mxu0 }
 0xb79   : > { %7136 = vmatpush3.bf16.msra.mxu1 %v4913_v44  ;;  %v7202_v16 = vpop.f32.mrb[70].mxu0 }
 0xb7a   : > { %v5443_v17 = vpack.c.bf16 %v7202_v16, %v7201_v14  ;;  %v5428_v18 = vpop.f32.mrb[71].mxu0  ;;  %7147 = vmatprep.subr.bf16.mxu1 %v7580_v30 }
 0xb7b   : > { %v5442_v19 = vpack.c.bf16 %v5428_v18, %v5425_v15 }
 0xb80   : > { %7138 = vmatmul.mubr.msk.bf16.vlgmr.msra.gmra.mrb[48].mxu1 %vm3243_vm4, %v6429_v20 }
 0xb81   : > { %7148 = vmatpush3.bf16.msra.mxu1 %v5018_v54  ;;  %7151 = vmatprep.mubr.msk.bf16.mxu1 %vm7581_vm5, %v7580_v30 }
 0xb82   : > { %7149 = vmatprep.subr.bf16.mxu1 %v7580_v30 }
 0xb85   : > { %7150 = vmatpush3.bf16.msra.mxu1 %v5019_v52  ;;  %v7569_v52 = vld [vmem:[%s7812_s21 + $0x10] sm:$0xff] }
 0xb86   : > { %7161 = vmatprep.subr.bf16.mxu1 %v7580_v30 }
 0xb8c   : > { %7152 = vmatmul.mubr.msk.bf16.vlgmr.msra.gmra.mrb[48].mxu1 %vm3243_vm4, %v6436_v21 }
 0xb8d   : > { %7162 = vmatpush3.bf16.msra.mxu1 %v5124_v60  ;;  %7165 = vmatprep.mubr.msk.bf16.mxu1 %vm7581_vm5, %v7580_v30 }
 0xb8e   : > { %7163 = vmatprep.subr.bf16.mxu1 %v7580_v30 }
 0xb91   : > { %7164 = vmatpush3.bf16.msra.mxu1 %v5125_v58 }
 0xb92   : > { %7175 = vmatprep.subr.bf16.mxu1 %v7580_v30 }
 0xb98   : > { %7166 = vmatmul.mubr.msk.bf16.vlgmr.msra.gmra.mrb[48].mxu1 %vm3243_vm4, %v6443_v22 }
 0xb99   : > { %7176 = vmatpush3.bf16.msra.mxu1 %v5230_v4  ;;  %7179 = vmatprep.mubr.msk.bf16.mxu1 %vm7581_vm5, %v7580_v30 }
 0xb9a   : > { %7177 = vmatprep.subr.bf16.mxu1 %v7580_v30 }
 0xb9d   : > { %7178 = vmatpush3.bf16.msra.mxu1 %v5231_v1 }
 0xb9e   : > { %7189 = vmatprep.subr.bf16.mxu1 %v7580_v30 }
 0xba4   : > { %7180 = vmatmul.mubr.msk.bf16.vlgmr.msra.gmra.mrb[48].mxu1 %vm3243_vm4, %v6450_v23 }
 0xba5   : > { %7190 = vmatpush3.bf16.msra.mxu1 %v5336_v13  ;;  %7193 = vmatprep.mubr.msk.bf16.mxu1 %vm7581_vm5, %v7580_v30 }
 0xba6   : > { %7191 = vmatprep.subr.bf16.mxu1 %v7580_v30 }
 0xba9   : > { %7192 = vmatpush3.bf16.msra.mxu1 %v5337_v9 }
 0xbaa   : > { %7203 = vmatprep.subr.bf16.mxu1 %v7580_v30 }
 0xbb0   : > { %7194 = vmatmul.mubr.msk.bf16.vlgmr.msra.gmra.mrb[48].mxu1 %vm3243_vm4, %v6457_v24 }
 0xbb1   : > { %7204 = vmatpush3.bf16.msra.mxu1 %v5442_v19  ;;  %7207 = vmatprep.mubr.msk.bf16.mxu1 %vm7581_vm5, %v7580_v30 }
 0xbb2   : > { %7205 = vmatprep.subr.bf16.mxu1 %v7580_v30  ;;  %v7565_v30 = vld [vmem:[%s8742_s19 + $0x34] ss:$8 sps:$4 sm:$0xff]  }
 0xbb3   : > { %5561 = vmatprep.subr.bf16.mxu0 %v7565_v30 }
 0xbb4   : > { %5562 = vmatpush1.bf16.msra.mxu0 %v7563_v28 }
 0xbb5   : > { %7206 = vmatpush3.bf16.msra.mxu1 %v5443_v17 }
 0xbbc   : > { %7208 = vmatmul.mubr.msk.bf16.vlgmr.msra.gmra.mrb[48].mxu1 %vm3243_vm4, %v6464_v25 }
 0xbbd   : > { %5646 = vmatprep.mubr.bf16.mxu1 %v7579_v2  ;;  %v5492_v2 = vpop.permute.xlu0 %5491 }
 0xc8f   : > { %v5481_v29 = vpop.f32.mrb[48].mxu1 }
 0xc90   : > { %v5494_v31 = vmul.f32 %v5492_v2, %v5481_v29  ;;  %v7209_v33 = vpop.f32.mrb[49].mxu1 }
 0xc91   : > { %v5484_v35 = vpop.f32.mrb[50].mxu1 }
 0xc92   : > { %v5501_v36 = vadd.f32 %v5499_v34, %v5494_v31  ;;  %v7210_v37 = vpop.f32.mrb[51].mxu1 }
 0xc94   : > { %v5502_v38 = vmax.f32 %v5501_v36, 0.0 }
 0xc96   : > { %v5503_v32 = vpack.c.bf16 %v5502_v38, %v5502_v38 }
 0xc98   : > { %6474 = vmatmul.mubr.msk.bf16.vlgmr.msra.gmra.mrb[72].mxu0 %vm3082_vm3, %v5503_v32 }
 0xd6b   : > { %v5589_v39 = vpop.f32.mrb[72].mxu0 }
 0xd6c   : > { %v5598_v40 = vpack.c.bf16 %v5589_v39, %v5589_v39  ;;  %v5591_v11 = vpop.f32.mrb[73].mxu0 }
 0xd6d   : > { %v5599_v41 = vpack.c.bf16 %v5591_v11, %v5591_v11  ;;  %v5593_v42 = vpop.f32.mrb[74].mxu0 }
 0xd6e   : > { %v5609_v43 = vsel %vm1138_vm2, %v5598_v40, 0  ;;  %v5594_v44 = vpop.f32.mrb[75].mxu0 }
 0xd6f   : > { %6476 = vmatprep.subr.msk.bf16.mxu1 %vm1138_vm2, %v5599_v41 }
 0xd70   : > { %5615 = vmatpush1.bf16.msra.mxu1 %v5609_v43 }
 0xd73   : > { %6477 = vmatmul.mubr.msk.bf16.vlgmr.msra.gmra.mrb[52].mxu1 %vm1131_vm1, %v7566_v45 }
 0xe46   : > { %v5648_v46 = vpop.f32.mrb[52].mxu1 }
 0xe47   : > { %v5649_v10 = vadd.f32 %v7567_v47, %v5648_v46  ;;  %v5650_v48 = vpop.f32.mrb[53].mxu1 }
 0xe48   : > { %v5651_v50 = vadd.f32 %v7568_v49, %v5650_v48  ;;  %v5652_v51 = vpop.f32.mrb[54].mxu1 }
 0xe49   : > { %5657 = vst [vmem:[%s663_s25] sm:$0xff] %v5649_v10  ;;  %v5653_v53 = vadd.f32 %v7569_v52, %v5652_v51  ;;  %v5654_v54 = vpop.f32.mrb[55].mxu1 }
 0xe4a   : > { %5658 = vst [vmem:[%s663_s25 + $0x8] sm:$0xff] %v5651_v50  ;;  %v5655_v56 = vadd.f32 %v7570_v55, %v5654_v54 }
 0xe4b   : > { %5659 = vst [vmem:[%s663_s25 + $0x10] sm:$0xff] %v5653_v53 }
 0xe4c   : > { %5660 = vst [vmem:[%s663_s25 + $0x18] sm:$0xff] %v5655_v56 }
 0xe4d PF: > { %s30_s1 = sadd.s32 1, %s7577_s1  }
 0xe4e   : > { %p27_p4 = scmp.ge.s32.totalorder %s30_s1, 4  }
 0xe50   :  { %29 = sbr.rel (!%p27_p4) target bundleno = 7 (0x7), region = 184 }

</bundles_post_ra>
